<compile_context>
chip_gen: v6e
topology: v6e:2x2x1
jax: 0.10.0
libtpu: 0.0.40
codegen_flags: <defaults>
</compile_context>

<pallas_src>
import functools
import numpy as np
import jax
import jax.numpy as jnp
from jax import lax
from jax.experimental import pallas as pl
from jax.experimental.pallas import tpu as pltpu


# ----------------------------------------------------------------------------
# Pallas kernel: Bt images (M = Bt*H rows) per grid step.
# ----------------------------------------------------------------------------
def _basic_block_kernel(a1_ref, w1_ref, s1_ref, b1_ref, w2_ref, s2_ref, b2_ref,
                        out_ref, *, H):
    """Fused conv3x3 -> BN -> ReLU -> conv3x3 -> BN -> +residual -> ReLU.

    a1_ref  : (M, 3*WC) f32  im2row-over-dy input slab (M = Bt*H rows)
    w1_ref  : (3*WC, WC) bf16 banded conv1 weights (dy stacked along K)
    s1_ref  : (1, WC)   f32  BN1 scale, tiled across width
    b1_ref  : (1, WC)   f32  BN1 bias,  tiled across width
    w2_ref  : (3*WC, WC) bf16 banded conv2 weights
    s2_ref  : (1, WC)   f32  BN2 scale
    b2_ref  : (1, WC)   f32  BN2 bias
    out_ref : (M, WC)   f32  output
    """
    M, WC = out_ref.shape

    a1_f32 = a1_ref[...]                              # (M, 3*WC) f32
    a1_bf = a1_f32.astype(jnp.bfloat16)               # MXU operand

    # ---- conv1: single K=3*WC matmul on the MXU, then BN1 (f32) + ReLU.
    acc1 = jnp.dot(a1_bf, w1_ref[...], preferred_element_type=jnp.float32)
    out1 = jnp.maximum(acc1 * s1_ref[...] + b1_ref[...], 0.0)   # (M, WC) f32

    # ---- build conv2 operand: per-image row-shifted dy bands, zero halos.
    # Row s belongs to image s // H; band0[s] = out1[s-1], band2[s] = out1[s+1]
    # within the same image, else 0.  Shifts use the XLU (roll) and the image
    # boundaries are masked with an in-image row-index iota.
    rid = lax.broadcasted_iota(jnp.int32, (M, 1), 0) % H
    down = pltpu.roll(out1, 1, axis=0)        # down[s] = out1[s-1]  (wrap masked)
    up = pltpu.roll(out1, M - 1, axis=0)      # up[s]   = out1[s+1]  (wrap masked)
    band0 = jnp.where(rid == 0, 0.0, down).astype(jnp.bfloat16)
    band1 = out1.astype(jnp.bfloat16)
    band2 = jnp.where(rid == H - 1, 0.0, up).astype(jnp.bfloat16)
    a2_bf = jnp.concatenate([band0, band1, band2], axis=-1)     # (M, 3*WC) bf16

    # ---- conv2: single matmul, BN2 (f32), exact-f32 residual, final ReLU.
    acc2 = jnp.dot(a2_bf, w2_ref[...], preferred_element_type=jnp.float32)
    residual = a1_f32[:, WC:2 * WC]           # middle dy band == original rows
    out_ref[...] = jnp.maximum(acc2 * s2_ref[...] + b2_ref[...] + residual,
                               0.0).astype(out_ref.dtype)


# ----------------------------------------------------------------------------
# Host-side parameter / layout preparation.
# ----------------------------------------------------------------------------
def bn_scale_bias(gamma, beta, mean, var, eps=1e-5):
    scale = gamma / jnp.sqrt(var + eps)               # (C,)
    bias = beta - mean * scale
    return scale, bias


def make_banded_weights(w_oihw, W):
    """(Cout, Cin, 3, 3) -> (3*W*Cin, W*Cout): dy taps stacked along K, dx taps
    and horizontal zero-padding folded into the (W*Cin, W*Cout) band.  Keeps
    every matmul operand 128+-lane dense for small C (here W*C = 256)."""
    Cout, Cin, KH, KW = w_oihw.shape
    w = np.asarray(w_oihw, np.float32)
    band = np.zeros((KH, W * Cin, W * Cout), np.float32)
    for dy in range(KH):
        for dx in range(KW):
            blk = w[:, :, dy, dx].T                   # (Cin, Cout)
            for xo in range(W):                       # output column
                xi = xo + dx - 1                      # input column
                if 0 <= xi < W:
                    band[dy, xi * Cin:(xi + 1) * Cin,
                         xo * Cout:(xo + 1) * Cout] = blk
    return jnp.asarray(band.reshape(KH * W * Cin, W * Cout))


def _pick_images_per_step(B, H, target_m=256):
    """Largest Bt dividing B with Bt*H <= target_m, preferring >=2 grid steps
    (v7x has 2 TensorCores)."""
    divisors = [d for d in range(1, B + 1) if B % d == 0]
    fits = [d for d in divisors if d * H <= target_m] or [1]
    multi = [d for d in fits if B // d >= 2]
    return max(multi) if multi else max(fits)


# ----------------------------------------------------------------------------
# Wrapper: layout plumbing + pallas_call.
# ----------------------------------------------------------------------------
def basic_block_forward(x_nchw, w1_oihw, bn1, w2_oihw, bn2, eps=1e-5):
    B, C, H, W = x_nchw.shape
    assert w1_oihw.shape == (C, C, 3, 3) and w2_oihw.shape == (C, C, 3, 3), (
        "This fused block assumes stride=1 and planes == inplanes "
        "(downsample=None), matching the module defaults.")
    WC = W * C
    K = 3 * WC

    s1, b1 = bn_scale_bias(*bn1, eps=eps)
    s2, b2 = bn_scale_bias(*bn2, eps=eps)
    w1b = make_banded_weights(w1_oihw, W).astype(jnp.bfloat16)
    w2b = make_banded_weights(w2_oihw, W).astype(jnp.bfloat16)
    s1_t = jnp.tile(s1, W).reshape(1, WC).astype(jnp.float32)
    b1_t = jnp.tile(b1, W).reshape(1, WC).astype(jnp.float32)
    s2_t = jnp.tile(s2, W).reshape(1, WC).astype(jnp.float32)
    b2_t = jnp.tile(b2, W).reshape(1, WC).astype(jnp.float32)

    # NCHW -> NHWC, pad rows only (columns are folded into the banded weights),
    # flatten (W,C) into one lane-dense axis, im2row over dy (K = 3*WC), and
    # collapse (B,H) into the matmul M axis.  Kept in f32 so the kernel gets an
    # exact residual; the bf16 cast for the MXU happens in-kernel.
    x_nhwc = jnp.transpose(x_nchw, (0, 2, 3, 1))
    x_pad = jnp.pad(x_nhwc, ((0, 0), (1, 1), (0, 0), (0, 0))).reshape(B, H + 2, WC)
    a1 = jnp.concatenate([x_pad[:, dy:dy + H, :] for dy in range(3)], axis=-1)
    a1 = a1.reshape(B * H, K).astype(jnp.float32)

    Bt = _pick_images_per_step(B, H)
    M = Bt * H
    grid = (B // Bt,)

    flops = 2 * 2 * B * H * W * C * C * 9                        # true conv MACs*2
    bytes_accessed = (a1.size * 4 + w1b.size * 2 + w2b.size * 2 +
                      4 * WC * 4 + B * H * WC * 4)

    kernel = functools.partial(_basic_block_kernel, H=H)
    out_flat = pl.pallas_call(
        kernel,
        out_shape=jax.ShapeDtypeStruct((B * H, WC), jnp.float32),
        grid=grid,
        in_specs=[
            pl.BlockSpec((M, K), lambda i: (i, 0)),       # im2row input slab
            pl.BlockSpec((K, WC), lambda i: (0, 0)),      # conv1 banded weights
            pl.BlockSpec((1, WC), lambda i: (0, 0)),      # BN1 scale
            pl.BlockSpec((1, WC), lambda i: (0, 0)),      # BN1 bias
            pl.BlockSpec((K, WC), lambda i: (0, 0)),      # conv2 banded weights
            pl.BlockSpec((1, WC), lambda i: (0, 0)),      # BN2 scale
            pl.BlockSpec((1, WC), lambda i: (0, 0)),      # BN2 bias
        ],
        out_specs=pl.BlockSpec((M, WC), lambda i: (i, 0)),
        compiler_params=pltpu.CompilerParams(
            dimension_semantics=("parallel",)),
        cost_estimate=pl.CostEstimate(flops=flops, transcendentals=0,
                                      bytes_accessed=bytes_accessed),
    )(a1, w1b, s1_t, b1_t, w2b, s2_t, b2_t)

    out_nhwc = out_flat.reshape(B, H, W, C)
    return jnp.transpose(out_nhwc, (0, 3, 1, 2))                 # back to NCHW


# ----------------------------------------------------------------------------
# References for validation.
# ----------------------------------------------------------------------------
def reference_forward_f32(x_nchw, w1, bn1, w2, bn2, eps=1e-5):
    """Pure f32 eval-mode BasicBlock (matches the PyTorch module)."""
    def conv(x, w):
        return lax.conv_general_dilated(
            x, w, (1, 1), 'SAME', dimension_numbers=('NCHW', 'OIHW', 'NCHW'))

    def bn(y, p):
        g, b, m, v = (t.reshape(1, -1, 1, 1) for t in p)
        return g * (y - m) / jnp.sqrt(v + eps) + b

    out = jax.nn.relu(bn(conv(x_nchw, w1), bn1))
    out = bn(conv(out, w2), bn2)
    return jax.nn.relu(out + x_nchw)


def reference_forward_matched(x_nchw, w1, s1, b1, w2, s2, b2):
    """Same math path as the kernel: bf16 conv operands / weights, f32 accum,
    f32 BN scale/bias, exact f32 residual."""
    q = lambda a: a.astype(jnp.bfloat16).astype(jnp.float32)
    r = lambda v: v.reshape(1, -1, 1, 1)

    def conv(x, w):
        return lax.conv_general_dilated(
            q(x), q(w), (1, 1), 'SAME',
            dimension_numbers=('NCHW', 'OIHW', 'NCHW'))

    out = jax.nn.relu(conv(x_nchw, w1) * r(s1) + r(b1))
    out = conv(out, w2) * r(s2) + r(b2)
    return jax.nn.relu(out + x_nchw)


# ----------------------------------------------------------------------------
if __name__ == "__main__":
    key = jax.random.PRNGKey(0)
    B, C, H, W = 16, 16, 16, 16          # inplanes = planes = 16, stride = 1
    ks = jax.random.split(key, 11)

    x_nchw = jax.random.normal(ks[0], (B, C, H, W), jnp.float32)

    w1 = 0.1 * jax.random.normal(ks[1], (C, C, 3, 3), jnp.float32)
    w2 = 0.1 * jax.random.normal(ks[2], (C, C, 3, 3), jnp.float32)
    bn1 = (jax.random.uniform(ks[3], (C,), jnp.float32, 0.5, 1.5),    # gamma
           0.1 * jax.random.normal(ks[4], (C,), jnp.float32),         # beta
           0.1 * jax.random.normal(ks[5], (C,), jnp.float32),         # running_mean
           jax.random.uniform(ks[6], (C,), jnp.float32, 0.5, 1.5))    # running_var
    bn2 = (jax.random.uniform(ks[7], (C,), jnp.float32, 0.5, 1.5),
           0.1 * jax.random.normal(ks[8], (C,), jnp.float32),
           0.1 * jax.random.normal(ks[9], (C,), jnp.float32),
           jax.random.uniform(ks[10], (C,), jnp.float32, 0.5, 1.5))

    out = basic_block_forward(x_nchw, w1, bn1, w2, bn2)
    out = jax.block_until_ready(out)
    assert out.shape == (B, C, H, W)

    # Tight structural check against a same-precision (bf16-operand) reference.
    s1, b1 = bn_scale_bias(*bn1)
    s2, b2 = bn_scale_bias(*bn2)
    ref_m = reference_forward_matched(x_nchw, w1, s1, b1, w2, s2, b2)
    assert jnp.allclose(out, ref_m, atol=1e-2, rtol=1e-2), \
        "mismatch vs bf16-matched reference"

    # Loose semantic check against the pure-f32 module reference; slack only
    # covers bf16 quantization of the MXU operands.
    ref_f = reference_forward_f32(x_nchw, w1, bn1, w2, bn2)
    assert jnp.allclose(out, ref_f, atol=0.25, rtol=0.05), \
        "mismatch vs f32 reference"

    print("KERNEL_OK")
</pallas_src>

<mosaic_0001>
module attributes {stable_mosaic.version = 11 : i64} {
  func.func @_basic_block_kernel(%arg0: i32, %arg1: memref<128x768xf32, #tpu.memory_space<vmem>>, %arg2: memref<768x256xbf16, #tpu.memory_space<vmem>>, %arg3: memref<1x256xf32, #tpu.memory_space<vmem>>, %arg4: memref<1x256xf32, #tpu.memory_space<vmem>>, %arg5: memref<768x256xbf16, #tpu.memory_space<vmem>>, %arg6: memref<1x256xf32, #tpu.memory_space<vmem>>, %arg7: memref<1x256xf32, #tpu.memory_space<vmem>>, %arg8: memref<128x256xf32, #tpu.memory_space<vmem>>) attributes {dimension_semantics = [#tpu.dimension_semantics<parallel>], iteration_bounds = array<i64: 2>, scalar_prefetch = 0 : i64, scratch_operands = 0 : i64, tpu.core_type = #tpu.core_type<tc>, window_params = [{transform_indices = @transform_0, window_bounds = array<i64: 128, 768>}, {pipeline_mode = #tpu.pipeline_mode<synchronous>, transform_indices = @transform_1, window_bounds = array<i64: 768, 256>}, {pipeline_mode = #tpu.pipeline_mode<synchronous>, transform_indices = @transform_2, window_bounds = array<i64: 1, 256>}, {pipeline_mode = #tpu.pipeline_mode<synchronous>, transform_indices = @transform_3, window_bounds = array<i64: 1, 256>}, {pipeline_mode = #tpu.pipeline_mode<synchronous>, transform_indices = @transform_4, window_bounds = array<i64: 768, 256>}, {pipeline_mode = #tpu.pipeline_mode<synchronous>, transform_indices = @transform_5, window_bounds = array<i64: 1, 256>}, {pipeline_mode = #tpu.pipeline_mode<synchronous>, transform_indices = @transform_6, window_bounds = array<i64: 1, 256>}, {transform_indices = @transform_7, window_bounds = array<i64: 128, 256>}]} {
    %c0 = arith.constant 0 : index
    %c0_0 = arith.constant 0 : index
    %0 = vector.load %arg1[%c0, %c0_0] : memref<128x768xf32, #tpu.memory_space<vmem>>, vector<128x768xf32>
    %1 = arith.truncf %0 : vector<128x768xf32> to vector<128x768xbf16>
    %c0_1 = arith.constant 0 : index
    %c0_2 = arith.constant 0 : index
    %2 = vector.load %arg2[%c0_1, %c0_2] : memref<768x256xbf16, #tpu.memory_space<vmem>>, vector<768x256xbf16>
    %cst = arith.constant dense<0.000000e+00> : vector<128x256xf32>
    %3 = tpu.matmul %1, %2, %cst {dimension_numbers = #tpu.dot_dimension_numbers<[1], [0], [0], [1], [0, 0, 1, 1], [], []>} : vector<128x768xbf16>, vector<768x256xbf16>, vector<128x256xf32> -> vector<128x256xf32>
    %c0_3 = arith.constant 0 : index
    %c0_4 = arith.constant 0 : index
    %4 = vector.load %arg3[%c0_3, %c0_4] : memref<1x256xf32, #tpu.memory_space<vmem>>, vector<1x256xf32>
    %5 = vector.broadcast %4 : vector<1x256xf32> to vector<128x256xf32>
    %6 = arith.mulf %3, %5 : vector<128x256xf32>
    %c0_5 = arith.constant 0 : index
    %c0_6 = arith.constant 0 : index
    %7 = vector.load %arg4[%c0_5, %c0_6] : memref<1x256xf32, #tpu.memory_space<vmem>>, vector<1x256xf32>
    %8 = vector.broadcast %7 : vector<1x256xf32> to vector<128x256xf32>
    %9 = arith.addf %6, %8 : vector<128x256xf32>
    %cst_7 = arith.constant 0.000000e+00 : f32
    %10 = vector.broadcast %cst_7 : f32 to vector<128x256xf32>
    %11 = arith.maximumf %9, %10 : vector<128x256xf32>
    %12 = tpu.iota {dimensions = array<i32: 0>} : vector<128x1xi32>
    %c16_i32 = arith.constant 16 : i32
    %c0_i32 = arith.constant 0 : i32
    %13 = arith.cmpi eq, %c16_i32, %c0_i32 : i32
    %c1_i32 = arith.constant 1 : i32
    %14 = arith.select %13, %c1_i32, %c16_i32 : i32
    %15 = vector.broadcast %14 : i32 to vector<128x1xi32>
    %16 = arith.remsi %12, %15 : vector<128x1xi32>
    %c0_i32_8 = arith.constant 0 : i32
    %17 = vector.broadcast %c0_i32_8 : i32 to vector<128x1xi32>
    %18 = arith.cmpi ne, %16, %17 : vector<128x1xi32>
    %c0_i32_9 = arith.constant 0 : i32
    %19 = vector.broadcast %c0_i32_9 : i32 to vector<128x1xi32>
    %20 = arith.cmpi slt, %16, %19 : vector<128x1xi32>
    %c0_i32_10 = arith.constant 0 : i32
    %21 = arith.cmpi slt, %14, %c0_i32_10 : i32
    %22 = vector.broadcast %21 : i1 to vector<128x1xi1>
    %23 = vector.broadcast %22 : vector<128x1xi1> to vector<128x1xi1>
    %24 = arith.xori %20, %23 : vector<128x1xi1>
    %25 = arith.andi %24, %18 : vector<128x1xi1>
    %26 = vector.broadcast %14 : i32 to vector<128x1xi32>
    %27 = arith.addi %16, %26 : vector<128x1xi32>
    %28 = arith.select %25, %27, %16 : vector<128x1xi1>, vector<128x1xi32>
    %c1_i32_11 = arith.constant 1 : i32
    %29 = tpu.dynamic_rotate %11 by %c1_i32_11 dim 0 : vector<128x256xf32>, i32 -> vector<128x256xf32>
    %c127_i32 = arith.constant 127 : i32
    %30 = tpu.dynamic_rotate %11 by %c127_i32 dim 0 : vector<128x256xf32>, i32 -> vector<128x256xf32>
    %c0_i32_12 = arith.constant 0 : i32
    %31 = vector.broadcast %c0_i32_12 : i32 to vector<128x1xi32>
    %32 = arith.cmpi eq, %28, %31 : vector<128x1xi32>
    %cst_13 = arith.constant 0.000000e+00 : f32
    %33 = vector.shape_cast %32 : vector<128x1xi1> to vector<128x1xi1>
    %34 = vector.broadcast %33 : vector<128x1xi1> to vector<128x256xi1>
    %35 = vector.broadcast %cst_13 : f32 to vector<128x256xf32>
    %36 = arith.select %34, %35, %29 : vector<128x256xi1>, vector<128x256xf32>
    %37 = arith.truncf %36 : vector<128x256xf32> to vector<128x256xbf16>
    %38 = arith.truncf %11 : vector<128x256xf32> to vector<128x256xbf16>
    %c15_i32 = arith.constant 15 : i32
    %39 = vector.broadcast %c15_i32 : i32 to vector<128x1xi32>
    %40 = arith.cmpi eq, %28, %39 : vector<128x1xi32>
    %cst_14 = arith.constant 0.000000e+00 : f32
    %41 = vector.shape_cast %40 : vector<128x1xi1> to vector<128x1xi1>
    %42 = vector.broadcast %41 : vector<128x1xi1> to vector<128x256xi1>
    %43 = vector.broadcast %cst_14 : f32 to vector<128x256xf32>
    %44 = arith.select %42, %43, %30 : vector<128x256xi1>, vector<128x256xf32>
    %45 = arith.truncf %44 : vector<128x256xf32> to vector<128x256xbf16>
    %46 = tpu.concatenate %37, %38, %45 in 1 : vector<128x256xbf16>, vector<128x256xbf16>, vector<128x256xbf16> -> vector<128x768xbf16>
    %c0_15 = arith.constant 0 : index
    %c0_16 = arith.constant 0 : index
    %47 = vector.load %arg5[%c0_15, %c0_16] : memref<768x256xbf16, #tpu.memory_space<vmem>>, vector<768x256xbf16>
    %cst_17 = arith.constant dense<0.000000e+00> : vector<128x256xf32>
    %48 = tpu.matmul %46, %47, %cst_17 {dimension_numbers = #tpu.dot_dimension_numbers<[1], [0], [0], [1], [0, 0, 1, 1], [], []>} : vector<128x768xbf16>, vector<768x256xbf16>, vector<128x256xf32> -> vector<128x256xf32>
    %49 = vector.extract_strided_slice %0 {offsets = [0, 256], sizes = [128, 256], strides = [1, 1]} : vector<128x768xf32> to vector<128x256xf32>
    %c0_18 = arith.constant 0 : index
    %c0_19 = arith.constant 0 : index
    %50 = vector.load %arg6[%c0_18, %c0_19] : memref<1x256xf32, #tpu.memory_space<vmem>>, vector<1x256xf32>
    %51 = vector.broadcast %50 : vector<1x256xf32> to vector<128x256xf32>
    %52 = arith.mulf %48, %51 : vector<128x256xf32>
    %c0_20 = arith.constant 0 : index
    %c0_21 = arith.constant 0 : index
    %53 = vector.load %arg7[%c0_20, %c0_21] : memref<1x256xf32, #tpu.memory_space<vmem>>, vector<1x256xf32>
    %54 = vector.broadcast %53 : vector<1x256xf32> to vector<128x256xf32>
    %55 = arith.addf %52, %54 : vector<128x256xf32>
    %56 = arith.addf %55, %49 : vector<128x256xf32>
    %cst_22 = arith.constant 0.000000e+00 : f32
    %57 = vector.broadcast %cst_22 : f32 to vector<128x256xf32>
    %58 = arith.maximumf %56, %57 : vector<128x256xf32>
    %c0_23 = arith.constant 0 : index
    %c0_24 = arith.constant 0 : index
    %59 = vector.load %arg8[%c0_23, %c0_24] : memref<128x256xf32, #tpu.memory_space<vmem>>, vector<128x256xf32>
    tpu.vector_store %arg8[%c0_23, %c0_24], %58 {strides = array<i32>} : memref<128x256xf32, #tpu.memory_space<vmem>>, vector<128x256xf32>,
    return
  }
  func.func @transform_0(%arg0: i32) -> (i32, i32) {
    %c0_i32 = arith.constant 0 : i32
    %c0_i32_0 = arith.constant 0 : i32
    return %arg0, %c0_i32 : i32, i32
  }
  func.func @transform_1(%arg0: i32) -> (i32, i32) {
    %c0_i32 = arith.constant 0 : i32
    %c0_i32_0 = arith.constant 0 : i32
    %c0_i32_1 = arith.constant 0 : i32
    return %c0_i32, %c0_i32_0 : i32, i32
  }
  func.func @transform_2(%arg0: i32) -> (i32, i32) {
    %c0_i32 = arith.constant 0 : i32
    %c0_i32_0 = arith.constant 0 : i32
    %c0_i32_1 = arith.constant 0 : i32
    return %c0_i32, %c0_i32_0 : i32, i32
  }
  func.func @transform_3(%arg0: i32) -> (i32, i32) {
    %c0_i32 = arith.constant 0 : i32
    %c0_i32_0 = arith.constant 0 : i32
    %c0_i32_1 = arith.constant 0 : i32
    return %c0_i32, %c0_i32_0 : i32, i32
  }
  func.func @transform_4(%arg0: i32) -> (i32, i32) {
    %c0_i32 = arith.constant 0 : i32
    %c0_i32_0 = arith.constant 0 : i32
    %c0_i32_1 = arith.constant 0 : i32
    return %c0_i32, %c0_i32_0 : i32, i32
  }
  func.func @transform_5(%arg0: i32) -> (i32, i32) {
    %c0_i32 = arith.constant 0 : i32
    %c0_i32_0 = arith.constant 0 : i32
    %c0_i32_1 = arith.constant 0 : i32
    return %c0_i32, %c0_i32_0 : i32, i32
  }
  func.func @transform_6(%arg0: i32) -> (i32, i32) {
    %c0_i32 = arith.constant 0 : i32
    %c0_i32_0 = arith.constant 0 : i32
    %c0_i32_1 = arith.constant 0 : i32
    return %c0_i32, %c0_i32_0 : i32, i32
  }
  func.func @transform_7(%arg0: i32) -> (i32, i32) {
    %c0_i32 = arith.constant 0 : i32
    %c0_i32_0 = arith.constant 0 : i32
    return %arg0, %c0_i32 : i32, i32
  }
}

</mosaic_0001>

<bundles_post_ra>
// kernel: tpu_custom_call.1
= control target key start
LH: loop header
LB: loop body
LE: loop exit
PB: predicated region body
PF: predicated region fallthrough
CT: control target
= control target key end

     0   :  { %s5787_s0 = inlined_call_operand.hbm [shape: f32[256,768], index: 0, kind: input, shape index: {}]   ;;  %s5788_s1 = inlined_call_operand.hbm [shape: bf16[768,256], index: 1, kind: input, shape index: {}]   ;;  %s5789_s2 = inlined_call_operand.vmem [shape: f32[1,256], index: 2, kind: input, shape index: {}]   ;;  %s5790_s3 = inlined_call_operand.vmem [shape: f32[1,256], index: 3, kind: input, shape index: {}]   ;;  %s5791_s4 = inlined_call_operand.hbm [shape: bf16[768,256], index: 4, kind: input, shape index: {}]   ;;  %s5792_s5 = inlined_call_operand.vmem [shape: f32[1,256], index: 5, kind: input, shape index: {}]   ;;  %s5793_s6 = inlined_call_operand.vmem [shape: f32[1,256], index: 6, kind: input, shape index: {}]   ;;  %s5794_s7 = inlined_call_operand.hbm [shape: f32[256,256], index: 7, kind: output, shape index: {}]  }
   0x1   :  { %5821 = sst [smem:[#allocation27_spill]] %s5788_s1 }
   0x2   :  { %12 = vsyncpa [#allocation3], 0 }
   0x3   :  { %14 = vsyncpa [#allocation3 + $0x1], 0 }
   0x4   :  { %15 = vsyncpa [#allocation6], 0 }
   0x5   :  { %16 = vsyncpa [#allocation4], 0 }
   0x6   :  { %18 = vsyncpa [#allocation4 + $0x1], 0  ;;  %s4215_s24 = smov 0   ;;  %s4217_s25 = smov 0  }
   0x7   :  { %s4219_s26 = smov 0   ;;  %s4221_s27 = smov 0  }
   0x8 LB: > { %s4236_s28 = sadd.s32 4294967295, %s4162_s27   ;;  %s3261_s29 = sadd.s32 4294967294, %s4162_s27   ;;  %s4162_s27 = sphi %s4221_s27, %s5956_s27   ;;  %s4158_s26 = sphi %s4219_s26, %s5955_s26   ;;  %s4154_s25 = sphi %s4217_s25, %s5954_s25   ;;  %s4150_s24 = sphi %s4215_s24, %s5953_s24  }
   0x9   : > { %p44_p0 = scmp.ne.s32.totalorder %s4154_s25, %s4150_s24  ;;  %p5795_p1 = scmp.eq.s32.totalorder %s4236_s28, 0 }
   0xa   : > { %p200_p3 = scmp.eq.s32.totalorder %s3261_s29, 1  ;;  %p3262_p5 = scmp.ge.s32.totalorder %s4162_s27, 1 }
   0xb   : > { %p4245_p4 = por %p5795_p1, %p44_p0  ;;  %p207_p7 = scmp.lt.s32.totalorder %s4162_s27, 3 }
   0xc   : > { %p4250_p6 = por %p200_p3, %p44_p0  ;;  %s4164_s10 = smov [#allocation5]  }
   0xd   : > { %s5822_s30 = scalar_select %p4245_p4, 1, 0 }
   0xe   : > { %s5823_s8 = scalar_select %p4250_p6, 1, 0 }
   0xf   : > { %p4255_p8 = pnand %p3262_p5, %p207_p7  ;;  %s219_s11 = sshll.u32 %s4164_s10, 4  ;;  %s220_s11 = int_to_ptr.vmem [resolvable:$true] %s219_s11 }
  0x10   : > { %s4165_s13 = smov [#allocation7]   ;;  %s4025_s15 = scalar_lea.vmem %s220_s11, 12288 }
  0x11   : > { %s5824_s9 = scalar_select %p4255_p8, 1, 0 }
  0x12   : > { %p3632_p9 = pneg %p4255_p8  ;;  %s238_s14 = sshll.u32 %s4165_s13, 4  ;;  %s239_s14 = int_to_ptr.vmem [resolvable:$true] %s238_s14 }
  0x13   : > { %p4026_p13 = scmp.ne.s32.totalorder %s220_s11, %s4025_s15  ;;  %p4033_p5 = scmp.lt.s32.totalorder %s220_s11, %s220_s11 }
  0x14   : > { %p4264_p11 = pnand %p3632_p9, %p5795_p1  ;;  %p4034_p7 = scmp.lt.s32.totalorder %s4025_s15, %s4025_s15 }
  0x16   : > { %p4016_p12 = pneg %p4264_p11  ;;  %p4035_p10 = por %p4034_p7, %p4033_p5 }
  0x18   : > { %p4028_p0 = pnand %p4026_p13, %p4016_p12 }
  0x1a   : > { %p4029_p3 = pneg %p4028_p0 }
  0x1c   : > { %p4036_p9 = pnand %p4035_p10, %p4029_p3 }
  0x1e   : > { %4039 = shalt.err (!%p4036_p9)
}
  0x1f   : > { %s4166_s16 = smov 128   ;;  %s4167_s17 = smov 8  }
  0x20   : > { %s5826_s1 = sld [smem:[#allocation27_spill]]  ;;  %s4051_s20 = scalar_lea.vmem %s239_s14, 12288 }
  0x21   : > { %p4052_p1 = scmp.ne.s32.totalorder %s239_s14, %s4051_s20  ;;  %p4059_p2 = scmp.lt.s32.totalorder %s239_s14, %s239_s14 }
  0x22   : > { %p4060_p6 = scmp.lt.s32.totalorder %s4051_s20, %s4051_s20 }
  0x23   : > { %p4054_p13 = pnand %p4052_p1, %p4016_p12 }
  0x24   : > { %p4061_p5 = por %p4060_p6, %p4059_p2 }
  0x25   : > { %p4055_p0 = pneg %p4054_p13 }
  0x26   : > { %3635 = dma.hbm_to_vmem [thread:$0]  (!%p4264_p11), %s5826_s1, 12288, %s220_s11, [#allocation6], %s4166_s16, %s4166_s16, %s4167_s17  }
  0x27   : > { %p4062_p10 = pnand %p4061_p5, %p4055_p0 }
  0x29   : > { %4065 = shalt.err (!%p4062_p10)
}
  0x2a   : > { %3638 = dma.hbm_to_vmem [thread:$0]  (!%p4264_p11), %s5791_s4, 12288, %s239_s14, [#allocation6], %s4166_s16, %s4166_s16, %s4167_s17  }
  0x2b   : > { %s4287_s23 = sadd.s32 1, %s4162_s27   ;;  %s31_s29 = sadd.s32 1, %s4158_s26 }
  0x2c   : > { %s28_s10 = ssub.s32 %s4162_s27, %s4287_s23  ;;  %p38_p1 = scmp.ne.s32.totalorder %s4158_s26, %s4154_s25 }
  0x2d   : > { %p29_p2 = scmp.eq.s32.totalorder %s28_s10, 0  ;;  %p39_p6 = scmp.eq.s32.totalorder %s4162_s27, 0 }
  0x2e   : > { %p5827_p12 = scmp.eq.s32.totalorder %s4236_s28, 1  ;;  %p3649_p7 = scmp.lt.s32.totalorder %s4162_s27, 2 }
  0x2f   : > { %s4303_s12 = scalar_select %p29_p2, %s4158_s26, %s31_s29  }
  0x30   : > { %p4297_p3 = por %p5827_p12, %p38_p1  ;;  %p40_p9 = por %p39_p6, %p38_p1 }
  0x31   : > { %s258_s13 = sand.u32 1, %s4158_s26   ;;  %s3618_s14 = smul.u32 12288, %s4162_s27 }
  0x32   : > { %s5828_s11 = scalar_select %p4297_p3, 1, 0 }
  0x33   : > { %s3617_s15 = smul.u32 768, %s258_s13  ;;  %p4307_p11 = pnand %p3649_p7, %p40_p9 }
  0x34   : > { %s4314_s19 = scalar_lea.hbm %s5787_s0, %s3618_s14  ;;  %s4318_s22 = scalar_lea.sflag [#allocation3], %s258_s13 }
  0x35   : > { %s262_s20 = scalar_lea.vmem [#allocation2], %s3617_s15  ;;  %s4066_s29 = scalar_lea.hbm %s4314_s19, 12288 }
  0x36   : > { %s270_s21 = sshll.u32 %s262_s20, 4  ;;  %p4067_p13 = scmp.ne.s32.totalorder %s4314_s19, %s4066_s29  ;;  %s4316_s21 = int_to_ptr.vmem [resolvable:$true] %s270_s21 }
  0x37   : > { %p4068_p0 = pneg %p4307_p11  ;;  %s4071_s14 = scalar_lea.hbm %s5787_s0, 24576 }
  0x38   : > { %p4072_p1 = scmp.lt.s32.totalorder %s4314_s19, %s5787_s0  ;;  %p4073_p2 = scmp.lt.s32.totalorder %s4071_s14, %s4066_s29 }
  0x39   : > { %p4069_p5 = pnand %p4068_p0, %p4067_p13 }
  0x3a   : > { %p4074_p6 = por %p4073_p2, %p4072_p1 }
  0x3b   : > { %p4070_p10 = pneg %p4069_p5 }
  0x3d   : > { %p4075_p12 = pnand %p4074_p6, %p4070_p10 }
  0x3f   : > { %4078 = shalt.err (!%p4075_p12)
}
  0x40   : > { %s4079_s13 = scalar_lea.vmem %s4316_s21, 12288  ;;  %s4168_s15 = smov [#allocation2]  }
  0x41   : > { %p4080_p7 = scmp.ne.s32.totalorder %s4316_s21, %s4079_s13  ;;  %s4084_s20 = sshll.u32 %s4168_s15, 4  ;;  %s4085_s20 = int_to_ptr.vmem [resolvable:$false] %s4084_s20 }
  0x42   : > { %s4086_s10 = scalar_lea.vmem %s4085_s20, 24576  ;;  %p4087_p5 = scmp.lt.s32.totalorder %s4316_s21, %s4085_s20 }
  0x43   : > { %p4082_p9 = pnand %p4080_p7, %p4068_p0  ;;  %p4088_p3 = scmp.lt.s32.totalorder %s4086_s10, %s4079_s13 }
  0x45   : > { %p4083_p13 = pneg %p4082_p9  ;;  %p4089_p4 = por %p4088_p3, %p4087_p5 }
  0x47   : > { %p4090_p8 = pnand %p4089_p4, %p4083_p13 }
  0x49   : > { %4093 = shalt.err (!%p4090_p8)
}
  0x4a   : > { %s4169_s1 = smov 768   ;;  %s4170_s29 = smov 48  }
  0x4b   : > { %3642 = dma.hbm_to_vmem [thread:$0]  (!%p4307_p11), %s4314_s19, 12288, %s4316_s21, %s4318_s22, %s4169_s1, %s4169_s1, %s4170_s29  }
  0x4c   : > { %p5830_p0 = scmp.ne.s32.totalorder %s5824_s9, 0 }
  0x4e   : > { %282 = sbr.rel (%p5830_p0) target bundleno = 837 (0x345), region = 48 }
  0x53   : > { %s4342_s17 = sand.u32 1, %s4154_s25   ;;  %p5831_p4 = scmp.ne.s32.totalorder %s5822_s30, 0 }
  0x54   : > { %s3619_s14 = smul.u32 768, %s4342_s17  ;;  %s285_s18 = scalar_lea.sflag [#allocation3], %s4342_s17 }
  0x56   : > { %s4346_s13 = scalar_lea.vmem [#allocation2], %s3619_s14 }
  0x57   : > { %4137 = dma.done.wait (%p5831_p4), %s285_s18, 12288  }
  0x58   : > { %4139 = vsyncadd (%p5831_p4), %s285_s18, 4294955008  ;;  %p5832_p8 = scmp.eq.s32.totalorder %s4236_s28, 0 }
  0x5a   : > { %4141 = dma.done.wait (%p5832_p8), [#allocation6], 24576   ;;  %p5833_p3 = pmov %p5832_p8 }
  0x5b   : > { %v3694_v0 = vld [vmem:[#allocation5 + $0x74] ss:$8 sps:$4 sm:$0xff]   ;;  %v3698_v2 = vld [vmem:[#allocation5 + $0x70] ss:$8 sps:$4 sm:$0xff]   ;;  %v3700_v4 = vld [vmem:[#allocation5 + $0x64] ss:$8 sps:$4 sm:$0xff]  }
  0x5c   : > { %4143 = vsyncadd (%p5833_p3), [#allocation6], 4294942720  ;;  %v3696_v1 = vld [vmem:[#allocation5 + $0x174] ss:$8 sps:$4 sm:$0xff]   ;;  %1049 = vmatprep.subr.bf16.mxu0 %v3694_v0  ;;  %v3699_v3 = vld [vmem:[#allocation5 + $0x170] ss:$8 sps:$4 sm:$0xff]  }
  0x5d   : > { %1162 = vmatprep.subr.bf16.mxu1 %v3696_v1  ;;  %1050 = vmatpush1.bf16.msra.mxu0 %v3698_v2  ;;  %v3702_v5 = vld [vmem:[#allocation5 + $0x164] ss:$8 sps:$4 sm:$0xff]   ;;  %v3704_v6 = vld [vmem:[#allocation5 + $0x60] ss:$8 sps:$4 sm:$0xff]   ;;  %v3706_v8 = vld [vmem:[#allocation5 + $0x54] ss:$8 sps:$4 sm:$0xff]  }
  0x5e   : > { %1163 = vmatpush1.bf16.msra.mxu1 %v3699_v3  ;;  %1051 = vmatprep.subr.bf16.mxu0 %v3700_v4  ;;  %v3705_v7 = vld [vmem:[#allocation5 + $0x160] ss:$8 sps:$4 sm:$0xff]   ;;  %v3708_v9 = vld [vmem:[#allocation5 + $0x154] ss:$8 sps:$4 sm:$0xff]   ;;  %v3710_v10 = vld [vmem:[#allocation5 + $0x50] ss:$8 sps:$4 sm:$0xff]  }
  0x5f   : > { %1164 = vmatprep.subr.bf16.mxu1 %v3702_v5  ;;  %v3711_v11 = vld [vmem:[#allocation5 + $0x150] ss:$8 sps:$4 sm:$0xff]   ;;  %v3712_v12 = vld [vmem:[#allocation5 + $0x44] ss:$8 sps:$4 sm:$0xff]   ;;  %v3716_v14 = vld [vmem:[#allocation5 + $0x40] ss:$8 sps:$4 sm:$0xff]  }
  0x60   : > { %v3714_v13 = vld [vmem:[#allocation5 + $0x144] ss:$8 sps:$4 sm:$0xff]   ;;  %v3717_v15 = vld [vmem:[#allocation5 + $0x140] ss:$8 sps:$4 sm:$0xff]   ;;  %v3718_v16 = vld [vmem:[#allocation5 + $0x34] ss:$8 sps:$4 sm:$0xff]  }
  0x61   : > { %1052 = vmatpush1.bf16.msra.mxu0 %v3704_v6  ;;  %v3720_v17 = vld [vmem:[#allocation5 + $0x134] ss:$8 sps:$4 sm:$0xff]   ;;  %v3722_v18 = vld [vmem:[#allocation5 + $0x30] ss:$8 sps:$4 sm:$0xff]   ;;  %v3724_v20 = vld [vmem:[#allocation5 + $0x24] ss:$8 sps:$4 sm:$0xff]  }
  0x62   : > { %1165 = vmatpush1.bf16.msra.mxu1 %v3705_v7  ;;  %1053 = vmatprep.subr.bf16.mxu0 %v3706_v8  ;;  %v3723_v19 = vld [vmem:[#allocation5 + $0x130] ss:$8 sps:$4 sm:$0xff]   ;;  %v3726_v21 = vld [vmem:[#allocation5 + $0x124] ss:$8 sps:$4 sm:$0xff]   ;;  %v3728_v22 = vld [vmem:[#allocation5 + $0x20] ss:$8 sps:$4 sm:$0xff]  }
  0x63   : > { %1166 = vmatprep.subr.bf16.mxu1 %v3708_v9  ;;  %v3729_v23 = vld [vmem:[#allocation5 + $0x120] ss:$8 sps:$4 sm:$0xff]   ;;  %v3730_v24 = vld [vmem:[#allocation5 + $0x14] ss:$8 sps:$4 sm:$0xff]   ;;  %v3734_v26 = vld [vmem:[#allocation5 + $0x10] ss:$8 sps:$4 sm:$0xff]  }
  0x64   : > { %v3732_v25 = vld [vmem:[#allocation5 + $0x114] ss:$8 sps:$4 sm:$0xff]   ;;  %v3735_v27 = vld [vmem:[#allocation5 + $0x110] ss:$8 sps:$4 sm:$0xff]   ;;  %v3736_v28 = vld [vmem:[#allocation5 + $0x4] ss:$8 sps:$4 sm:$0xff]  }
  0x65   : > { %1054 = vmatpush1.bf16.msra.mxu0 %v3710_v10  ;;  %v3738_v29 = vld [vmem:[#allocation5 + $0x104] ss:$8 sps:$4 sm:$0xff]   ;;  %v3740_v30 = vld [vmem:[#allocation5] ss:$8 sps:$4 sm:$0xff]   ;;  %v3742_v32 = vld [vmem:[#allocation5 + $0xf4] ss:$8 sps:$4 sm:$0xff]  }
  0x66   : > { %1167 = vmatpush1.bf16.msra.mxu1 %v3711_v11  ;;  %1055 = vmatprep.subr.bf16.mxu0 %v3712_v12  ;;  %v3741_v31 = vld [vmem:[#allocation5 + $0x100] ss:$8 sps:$4 sm:$0xff]   ;;  %v3744_v33 = vld [vmem:[#allocation5 + $0x1f4] ss:$8 sps:$4 sm:$0xff]   ;;  %v3746_v34 = vld [vmem:[#allocation5 + $0xf0] ss:$8 sps:$4 sm:$0xff]  }
  0x67   : > { %1168 = vmatprep.subr.bf16.mxu1 %v3714_v13  ;;  %v3747_v35 = vld [vmem:[#allocation5 + $0x1f0] ss:$8 sps:$4 sm:$0xff]   ;;  %v3748_v36 = vld [vmem:[#allocation5 + $0xe4] ss:$8 sps:$4 sm:$0xff]   ;;  %v3752_v38 = vld [vmem:[#allocation5 + $0xe0] ss:$8 sps:$4 sm:$0xff]  }
  0x68   : > { %v3750_v37 = vld [vmem:[#allocation5 + $0x1e4] ss:$8 sps:$4 sm:$0xff]   ;;  %v3753_v39 = vld [vmem:[#allocation5 + $0x1e0] ss:$8 sps:$4 sm:$0xff]   ;;  %v3754_v40 = vld [vmem:[#allocation5 + $0xd4] ss:$8 sps:$4 sm:$0xff]  }
  0x69   : > { %1056 = vmatpush1.bf16.msra.mxu0 %v3716_v14  ;;  %v3756_v41 = vld [vmem:[#allocation5 + $0x1d4] ss:$8 sps:$4 sm:$0xff]   ;;  %v3758_v42 = vld [vmem:[#allocation5 + $0xd0] ss:$8 sps:$4 sm:$0xff]   ;;  %v3760_v44 = vld [vmem:[#allocation5 + $0xc4] ss:$8 sps:$4 sm:$0xff]  }
  0x6a   : > { %1169 = vmatpush1.bf16.msra.mxu1 %v3717_v15  ;;  %1057 = vmatprep.subr.bf16.mxu0 %v3718_v16  ;;  %v3759_v43 = vld [vmem:[#allocation5 + $0x1d0] ss:$8 sps:$4 sm:$0xff]   ;;  %v3762_v45 = vld [vmem:[#allocation5 + $0x1c4] ss:$8 sps:$4 sm:$0xff]   ;;  %v3764_v50 = vld [vmem:[#allocation5 + $0xc0] ss:$8 sps:$4 sm:$0xff]  }
  0x6b   : > { %1170 = vmatprep.subr.bf16.mxu1 %v3720_v17  ;;  %v330_v46 = vld [vmem:[%s4346_s13 + $0x8] sm:$0xff]  ;;  %v336_v47 = vld [vmem:[%s4346_s13 + $0x38] sm:$0xff]  ;;  %v329_v6 = vld [vmem:[%s4346_s13] sm:$0xff]  ;;  %vm4171_vm5 = vmmov 1   ;;  %s3272_s10 = sshll.u32 %s4342_s17, 8  ;;  %s3600_s29 = sshll.u32 %s4236_s28, 12 }
  0x6c   : > { %v332_v48 = vld [vmem:[%s4346_s13 + $0x18] sm:$0xff]  ;;  %v338_v49 = vld [vmem:[%s4346_s13 + $0x48] sm:$0xff]  ;;  %v426_v53 = vpack.c.bf16 %v336_v47, %v330_v46  ;;  %v335_v7 = vld [vmem:[%s4346_s13 + $0x30] sm:$0xff]  ;;  %s5560_s1 = scalar_lea.vmem [#allocation8], %s3272_s10  ;;  %s5740_s9 = scalar_lea.hbm %s5794_s7, %s3600_s29 }
  0x6d   : > { %1058 = vmatpush1.bf16.msra.mxu0 %v3722_v18  ;;  %v3765_v51 = vld [vmem:[#allocation5 + $0x1c0] ss:$8 sps:$4 sm:$0xff]   ;;  %v3766_v52 = vld [vmem:[#allocation5 + $0xb4] ss:$8 sps:$4 sm:$0xff]   ;;  %v428_v54 = vpack.c.bf16 %v338_v49, %v332_v48  ;;  %v3770_v56 = vld [vmem:[#allocation5 + $0xb0] ss:$8 sps:$4 sm:$0xff]   ;;  %v425_v15 = vpack.c.bf16 %v335_v7, %v329_v6 }
  0x6e   : > { %1171 = vmatpush1.bf16.msra.mxu1 %v3723_v19  ;;  %1059 = vmatprep.subr.bf16.mxu0 %v3724_v20  ;;  %v3768_v55 = vld [vmem:[#allocation5 + $0x1b4] ss:$8 sps:$4 sm:$0xff]   ;;  %v3771_v57 = vld [vmem:[#allocation5 + $0x1b0] ss:$8 sps:$4 sm:$0xff]   ;;  %v3772_v58 = vld [vmem:[#allocation5 + $0xa4] ss:$8 sps:$4 sm:$0xff]  }
  0x6f   : > { %1172 = vmatprep.subr.bf16.mxu1 %v3726_v21  ;;  %1081 = vmatprep.mubr.bf16.mxu0 %v426_v53  ;;  %v3774_v59 = vld [vmem:[#allocation5 + $0x1a4] ss:$8 sps:$4 sm:$0xff]   ;;  %v3776_v60 = vld [vmem:[#allocation5 + $0xa0] ss:$8 sps:$4 sm:$0xff]   ;;  %v3778_v62 = vld [vmem:[#allocation5 + $0x94] ss:$8 sps:$4 sm:$0xff]  }
  0x70   : > { %1194 = vmatprep.mubr.bf16.mxu1 %v428_v54  ;;  %v3777_v61 = vld [vmem:[#allocation5 + $0x1a0] ss:$8 sps:$4 sm:$0xff]   ;;  %v3780_v63 = vld [vmem:[#allocation5 + $0x194] ss:$8 sps:$4 sm:$0xff]   ;;  %v3782_v0 = vld [vmem:[#allocation5 + $0x90] ss:$8 sps:$4 sm:$0xff]  }
  0x71   : > { %1060 = vmatpush1.bf16.msra.mxu0 %v3728_v22  ;;  %v3783_v1 = vld [vmem:[#allocation5 + $0x190] ss:$8 sps:$4 sm:$0xff]   ;;  %v3784_v2 = vld [vmem:[#allocation5 + $0x84] ss:$8 sps:$4 sm:$0xff]   ;;  %v3788_v4 = vld [vmem:[#allocation5 + $0x80] ss:$8 sps:$4 sm:$0xff]  }
  0x72   : > { %1173 = vmatpush1.bf16.msra.mxu1 %v3729_v23  ;;  %1061 = vmatprep.subr.bf16.mxu0 %v3730_v24  ;;  %v3786_v3 = vld [vmem:[#allocation5 + $0x184] ss:$8 sps:$4 sm:$0xff]   ;;  %v3789_v5 = vld [vmem:[#allocation5 + $0x180] ss:$8 sps:$4 sm:$0xff]   ;;  %v331_v8 = vld [vmem:[%s4346_s13 + $0x10] sm:$0xff]  ;;  %s3169_s14 = sshll.u32 %s5560_s1, 4  ;;  %s5742_s14 = int_to_ptr.vmem [resolvable:$true] %s3169_s14 }
  0x73   : > { %1174 = vmatprep.subr.bf16.mxu1 %v3732_v25  ;;  %v337_v9 = vld [vmem:[%s4346_s13 + $0x40] sm:$0xff]  ;;  %v3792_v10 = vld [vmem:[#allocation5 + $0x274] ss:$8 sps:$4 sm:$0xff]   ;;  %v342_v11 = vld [vmem:[%s4346_s13 + $0x68] sm:$0xff]  ;;  %s3155_s28 = scalar_lea.sflag [#allocation4], %s4342_s17  ;;  %s4094_s16 = scalar_lea.vmem %s5742_s14, 4096 }
  0x74   : > { %v348_v12 = vld [vmem:[%s4346_s13 + $0x98] sm:$0xff]  ;;  %v350_v14 = vld [vmem:[%s4346_s13 + $0xa8] sm:$0xff]  ;;  %v427_v16 = vpack.c.bf16 %v337_v9, %v331_v8  ;;  %v341_v22 = vld [vmem:[%s4346_s13 + $0x60] sm:$0xff]  ;;  %p4095_p11 = scmp.ne.s32.totalorder %s5742_s14, %s4094_s16  ;;  %p5950_p10 = scmp.ne.s32.totalorder %s5828_s11, 0 }
  0x75   : > { %1062 = vmatpush1.bf16.msra.mxu0 %v3734_v26  ;;  %v344_v13 = vld [vmem:[%s4346_s13 + $0x78] sm:$0xff]  ;;  %v432_v18 = vpack.c.bf16 %v348_v12, %v342_v11  ;;  %v3795_v19 = vld [vmem:[#allocation5 + $0x264] ss:$8 sps:$4 sm:$0xff]   ;;  %v3793_v21 = vld [vmem:[#allocation5 + $0x260] ss:$8 sps:$4 sm:$0xff]  }
  0x76   : > { %1175 = vmatpush1.bf16.msra.mxu1 %v3735_v27  ;;  %1063 = vmatprep.subr.bf16.mxu0 %v3736_v28  ;;  %v3790_v17 = vld [vmem:[#allocation5 + $0x270] ss:$8 sps:$4 sm:$0xff]   ;;  %v434_v20 = vpack.c.bf16 %v350_v14, %v344_v13  ;;  %v349_v25 = vld [vmem:[%s4346_s13 + $0xa0] sm:$0xff]  ;;  %v3798_v26 = vld [vmem:[#allocation5 + $0x254] ss:$8 sps:$4 sm:$0xff]   ;;  %p4096_p1 = pnand %p4095_p11, %p5950_p10 }
  0x77   : > { %1176 = vmatprep.subr.bf16.mxu1 %v3738_v29  ;;  %v347_v23 = vld [vmem:[%s4346_s13 + $0x90] sm:$0xff]  ;;  %v354_v27 = vld [vmem:[%s4346_s13 + $0xc8] sm:$0xff]  ;;  %v360_v28 = vld [vmem:[%s4346_s13 + $0xf8] sm:$0xff] }
  0x78   : > { %v343_v24 = vld [vmem:[%s4346_s13 + $0x70] sm:$0xff]  ;;  %v356_v29 = vld [vmem:[%s4346_s13 + $0xd8] sm:$0xff]  ;;  %v374_v46 = vld [vmem:[%s4346_s13 + $0x168] sm:$0xff]  ;;  %p4097_p2 = pneg %p4096_p1 }
  0x79   : > { %1064 = vmatpush1.bf16.msra.mxu0 %v3740_v30  ;;  %v362_v30 = vld [vmem:[%s4346_s13 + $0x108] sm:$0xff]  ;;  %v3802_v49 = vld [vmem:[#allocation5 + $0x230] ss:$8 sps:$4 sm:$0xff]   ;;  %v365_v54 = vld [vmem:[%s4346_s13 + $0x120] sm:$0xff] }
  0x7a   : > { %1177 = vmatpush1.bf16.msra.mxu1 %v3741_v31  ;;  %1065 = vmatprep.subr.bf16.mxu0 %v3742_v32  ;;  %v431_v31 = vpack.c.bf16 %v347_v23, %v341_v22  ;;  %v433_v32 = vpack.c.bf16 %v349_v25, %v343_v24  ;;  %v3805_v53 = vld [vmem:[#allocation5 + $0x220] ss:$8 sps:$4 sm:$0xff]   ;;  %v383_v7 = vld [vmem:[%s4346_s13 + $0x1b0] sm:$0xff]  ;;  %v396_v12 = vld [vmem:[%s4346_s13 + $0x218] sm:$0xff] }
  0x7b   : > { %1178 = vmatprep.subr.bf16.mxu1 %v3744_v33  ;;  %v3796_v33 = vld [vmem:[#allocation5 + $0x250] ss:$8 sps:$4 sm:$0xff]   ;;  %v377_v6 = vld [vmem:[%s4346_s13 + $0x180] sm:$0xff]  ;;  %v390_v11 = vld [vmem:[%s4346_s13 + $0x1e8] sm:$0xff] }
  0x7c   : > { %v379_v8 = vld [vmem:[%s4346_s13 + $0x190] sm:$0xff]  ;;  %v385_v9 = vld [vmem:[%s4346_s13 + $0x1c0] sm:$0xff]  ;;  %v392_v13 = vld [vmem:[%s4346_s13 + $0x1f8] sm:$0xff] }
  0x7d   : > { %1066 = vmatpush2.bf16.msra.mxu0 %v3746_v34  ;;  %v438_v34 = vpack.c.bf16 %v360_v28, %v354_v27  ;;  %v398_v14 = vld [vmem:[%s4346_s13 + $0x228] sm:$0xff]  ;;  %v389_v22 = vld [vmem:[%s4346_s13 + $0x1e0] sm:$0xff]  ;;  %v395_v23 = vld [vmem:[%s4346_s13 + $0x210] sm:$0xff] }
  0x7e   : > { %1179 = vmatpush2.bf16.msra.mxu1 %v3747_v35  ;;  %1067 = vmatprep.subr.bf16.mxu0 %v3748_v36  ;;  %v3801_v35 = vld [vmem:[#allocation5 + $0x244] ss:$8 sps:$4 sm:$0xff]   ;;  %v440_v36 = vpack.c.bf16 %v362_v30, %v356_v29  ;;  %v391_v24 = vld [vmem:[%s4346_s13 + $0x1f0] sm:$0xff]  ;;  %v408_v28 = vld [vmem:[%s4346_s13 + $0x278] sm:$0xff] }
  0x7f   : > { %1180 = vmatprep.subr.bf16.mxu1 %v3750_v37  ;;  %v3799_v37 = vld [vmem:[#allocation5 + $0x240] ss:$8 sps:$4 sm:$0xff]   ;;  %v404_v29 = vld [vmem:[%s4346_s13 + $0x258] sm:$0xff] }
  0x80   : > { %v397_v25 = vld [vmem:[%s4346_s13 + $0x220] sm:$0xff]  ;;  %v402_v27 = vld [vmem:[%s4346_s13 + $0x248] sm:$0xff] }
  0x81   : > { %1068 = vmatpush2.bf16.msra.mxu0 %v3752_v38  ;;  %v353_v38 = vld [vmem:[%s4346_s13 + $0xc0] sm:$0xff]  ;;  %v410_v30 = vld [vmem:[%s4346_s13 + $0x288] sm:$0xff] }
  0x82   : > { %1181 = vmatpush2.bf16.msra.mxu1 %v3753_v39  ;;  %1069 = vmatprep.subr.bf16.mxu0 %v3754_v40  ;;  %v359_v39 = vld [vmem:[%s4346_s13 + $0xf0] sm:$0xff] }
  0x83   : > { %1182 = vmatprep.subr.bf16.mxu1 %v3756_v41  ;;  %v355_v40 = vld [vmem:[%s4346_s13 + $0xd0] sm:$0xff]  ;;  %v361_v41 = vld [vmem:[%s4346_s13 + $0x100] sm:$0xff]  ;;  %v437_v47 = vpack.c.bf16 %v359_v39, %v353_v38 }
  0x84   : > { %v439_v48 = vpack.c.bf16 %v361_v41, %v355_v40  ;;  %v401_v38 = vld [vmem:[%s4346_s13 + $0x240] sm:$0xff]  ;;  %v407_v39 = vld [vmem:[%s4346_s13 + $0x270] sm:$0xff] }
  0x85   : > { %1070 = vmatpush2.bf16.msra.mxu0 %v3758_v42  ;;  %v3804_v42 = vld [vmem:[#allocation5 + $0x234] ss:$8 sps:$4 sm:$0xff]   ;;  %v409_v41 = vld [vmem:[%s4346_s13 + $0x280] sm:$0xff] }
  0x86   : > { %1183 = vmatpush2.bf16.msra.mxu1 %v3759_v43  ;;  %1071 = vmatprep.subr.bf16.mxu0 %v3760_v44  ;;  %v366_v43 = vld [vmem:[%s4346_s13 + $0x128] sm:$0xff]  ;;  %v372_v44 = vld [vmem:[%s4346_s13 + $0x158] sm:$0xff]  ;;  %v403_v40 = vld [vmem:[%s4346_s13 + $0x250] sm:$0xff] }
  0x87   : > { %1184 = vmatprep.subr.bf16.mxu1 %v3762_v45  ;;  %v368_v45 = vld [vmem:[%s4346_s13 + $0x138] sm:$0xff] }
  0x89   : > { %1072 = vmatpush2.bf16.msra.mxu0 %v3764_v50  ;;  %v444_v50 = vpack.c.bf16 %v372_v44, %v366_v43  ;;  %v414_v43 = vld [vmem:[%s4346_s13 + $0x2a8] sm:$0xff]  ;;  %v420_v44 = vld [vmem:[%s4346_s13 + $0x2d8] sm:$0xff] }
  0x8a   : > { %1185 = vmatpush2.bf16.msra.mxu1 %v3765_v51  ;;  %1073 = vmatprep.subr.bf16.mxu0 %v3766_v52  ;;  %v3807_v51 = vld [vmem:[#allocation5 + $0x224] ss:$8 sps:$4 sm:$0xff]   ;;  %v446_v52 = vpack.c.bf16 %v374_v46, %v368_v45  ;;  %v416_v45 = vld [vmem:[%s4346_s13 + $0x2b8] sm:$0xff] }
  0x8b   : > { %1186 = vmatprep.subr.bf16.mxu1 %v3768_v55  ;;  %v371_v55 = vld [vmem:[%s4346_s13 + $0x150] sm:$0xff]  ;;  %v422_v46 = vld [vmem:[%s4346_s13 + $0x2e8] sm:$0xff] }
  0x8d   : > { %1074 = vmatpush2.bf16.msra.mxu0 %v3770_v56  ;;  %v367_v56 = vld [vmem:[%s4346_s13 + $0x130] sm:$0xff] }
  0x8e   : > { %1187 = vmatpush2.bf16.msra.mxu1 %v3771_v57  ;;  %1075 = vmatprep.subr.bf16.mxu0 %v3772_v58  ;;  %v373_v57 = vld [vmem:[%s4346_s13 + $0x160] sm:$0xff]  ;;  %v3810_v58 = vld [vmem:[#allocation5 + $0x214] ss:$8 sps:$4 sm:$0xff]  }
  0x8f   : > { %1188 = vmatprep.subr.bf16.mxu1 %v3774_v59  ;;  %v378_v59 = vld [vmem:[%s4346_s13 + $0x188] sm:$0xff] }
  0x91   : > { %1076 = vmatpush2.bf16.msra.mxu0 %v3776_v60  ;;  %v384_v60 = vld [vmem:[%s4346_s13 + $0x1b8] sm:$0xff] }
  0x92   : > { %1189 = vmatpush2.bf16.msra.mxu1 %v3777_v61  ;;  %1077 = vmatprep.subr.bf16.mxu0 %v3778_v62  ;;  %v380_v61 = vld [vmem:[%s4346_s13 + $0x198] sm:$0xff]  ;;  %v386_v62 = vld [vmem:[%s4346_s13 + $0x1c8] sm:$0xff] }
  0x93   : > { %1190 = vmatprep.subr.bf16.mxu1 %v3780_v63  ;;  %v443_v63 = vpack.c.bf16 %v371_v55, %v365_v54  ;;  %v413_v54 = vld [vmem:[%s4346_s13 + $0x2a0] sm:$0xff]  ;;  %v419_v55 = vld [vmem:[%s4346_s13 + $0x2d0] sm:$0xff] }
  0x95   : > { %1078 = vmatpush2.bf16.msra.mxu0 %v3782_v0  ;;  %v445_v0 = vpack.c.bf16 %v373_v57, %v367_v56  ;;  %v415_v56 = vld [vmem:[%s4346_s13 + $0x2b0] sm:$0xff]  ;;  %v421_v57 = vld [vmem:[%s4346_s13 + $0x2e0] sm:$0xff] }
  0x96   : > { %1191 = vmatpush2.bf16.msra.mxu1 %v3783_v1  ;;  %1079 = vmatprep.subr.bf16.mxu0 %v3784_v2  ;;  %v3808_v1 = vld [vmem:[#allocation5 + $0x210] ss:$8 sps:$4 sm:$0xff]   ;;  %v450_v2 = vpack.c.bf16 %v384_v60, %v378_v59  ;;  %v334_v59 = vld [vmem:[%s4346_s13 + $0x28] sm:$0xff] }
  0x97   : > { %1192 = vmatprep.subr.bf16.mxu1 %v3786_v3  ;;  %v3813_v3 = vld [vmem:[#allocation5 + $0x204] ss:$8 sps:$4 sm:$0xff]   ;;  %v340_v60 = vld [vmem:[%s4346_s13 + $0x58] sm:$0xff] }
  0x99   : > { %1080 = vmatpush2.bf16.msra.mxu0 %v3788_v4  ;;  %v452_v4 = vpack.c.bf16 %v386_v62, %v380_v61  ;;  %v3832_v61 = vld [vmem:[#allocation5 + $0x290] ss:$8 sps:$4 sm:$0xff]   ;;  %v467_v62 = vpack.c.bf16 %v419_v55, %v413_v54  ;;  %v418_v55 = vld [vmem:[%s4346_s13 + $0x2c8] sm:$0xff] }
  0x9a   : > { %1193 = vmatpush2.bf16.msra.mxu1 %v3789_v5  ;;  %1275 = vmatprep.subr.bf16.mxu0 %v3792_v10  ;;  %v3811_v5 = vld [vmem:[#allocation5 + $0x200] ss:$8 sps:$4 sm:$0xff]   ;;  %v3816_v10 = vld [vmem:[#allocation5 + $0x2f4] ss:$8 sps:$4 sm:$0xff]   ;;  %v3856_v54 = vld [vmem:[#allocation7 + $0x110] ss:$8 sps:$4 sm:$0xff]  }
  0x9c   : > { %1082 = vmatmul.mubr.bf16.vlgmr.msra.gmra.mxu0 %v425_v15  ;;  %v449_v15 = vpack.c.bf16 %v383_v7, %v377_v6  ;;  %v352_v6 = vld [vmem:[%s4346_s13 + $0xb8] sm:$0xff] }
  0x9d   : > { %1195 = vmatmul.mubr.bf16.vlgmr.msra.gmra.mxu1 %v427_v16  ;;  %1276 = vmatpush1.bf16.msra.mxu0 %v3790_v17  ;;  %v451_v16 = vpack.c.bf16 %v385_v9, %v379_v8  ;;  %v3814_v17 = vld [vmem:[#allocation5 + $0x2f0] ss:$8 sps:$4 sm:$0xff]   ;;  %v345_v9 = vld [vmem:[%s4346_s13 + $0x80] sm:$0xff] }
  0x9e   : > { %1091 = vmatprep.mubr.bf16.mxu0 %v432_v18  ;;  %1277 = vmatprep.subr.bf16.mxu0 %v3795_v19  ;;  %v3819_v18 = vld [vmem:[#allocation5 + $0x2e4] ss:$8 sps:$4 sm:$0xff]   ;;  %v456_v19 = vpack.c.bf16 %v396_v12, %v390_v11  ;;  %v364_v12 = vld [vmem:[%s4346_s13 + $0x118] sm:$0xff] }
  0x9f   : > { %1204 = vmatprep.mubr.bf16.mxu1 %v434_v20  ;;  %v458_v20 = vpack.c.bf16 %v398_v14, %v392_v13  ;;  %v358_v11 = vld [vmem:[%s4346_s13 + $0xe8] sm:$0xff] }
  0xa0   : > { %v442_v14 = vpack.c.bf16 %v364_v12, %v358_v11  ;;  %v3877_v11 = vld [vmem:[#allocation7 + $0x1a0] ss:$8 sps:$4 sm:$0xff]   ;;  %v3882_v12 = vld [vmem:[#allocation7 + $0x194] ss:$8 sps:$4 sm:$0xff]  }
  0xa1   : > { %1278 = vmatpush1.bf16.msra.mxu0 %v3793_v21  ;;  %v3817_v21 = vld [vmem:[#allocation5 + $0x2e0] ss:$8 sps:$4 sm:$0xff]  }
  0xa2   : > { %1279 = vmatprep.subr.bf16.mxu0 %v3798_v26  ;;  %v3822_v26 = vld [vmem:[#allocation5 + $0x2d4] ss:$8 sps:$4 sm:$0xff]  }
  0xa4   : > { %1092 = vmatmul.mubr.bf16.gmra.mxu0 %v431_v31  ;;  %v3820_v31 = vld [vmem:[#allocation5 + $0x2d0] ss:$8 sps:$4 sm:$0xff]  }
  0xa5   : > { %1205 = vmatmul.mubr.bf16.gmra.mxu1 %v433_v32  ;;  %1280 = vmatpush1.bf16.msra.mxu0 %v3796_v33  ;;  %v455_v32 = vpack.c.bf16 %v395_v23, %v389_v22  ;;  %v457_v33 = vpack.c.bf16 %v397_v25, %v391_v24  ;;  %v369_v22 = vld [vmem:[%s4346_s13 + $0x140] sm:$0xff]  ;;  %v375_v23 = vld [vmem:[%s4346_s13 + $0x170] sm:$0xff]  ;;  %v382_v25 = vld [vmem:[%s4346_s13 + $0x1a8] sm:$0xff] }
  0xa6   : > { %1101 = vmatprep.mubr.bf16.mxu0 %v438_v34  ;;  %1281 = vmatprep.subr.bf16.mxu0 %v3801_v35  ;;  %v3825_v34 = vld [vmem:[#allocation5 + $0x2c4] ss:$8 sps:$4 sm:$0xff]   ;;  %v462_v35 = vpack.c.bf16 %v408_v28, %v402_v27  ;;  %v3838_v24 = vld [vmem:[#allocation7 + $0x170] ss:$8 sps:$4 sm:$0xff]   ;;  %v447_v27 = vpack.c.bf16 %v375_v23, %v369_v22  ;;  %v3895_v23 = vld [vmem:[#allocation7 + $0x40] ss:$8 sps:$4 sm:$0xff]  }
  0xa7   : > { %1214 = vmatprep.mubr.bf16.mxu1 %v440_v36  ;;  %v464_v36 = vpack.c.bf16 %v410_v30, %v404_v29  ;;  %v3843_v28 = vld [vmem:[#allocation7 + $0x164] ss:$8 sps:$4 sm:$0xff]   ;;  %v3841_v30 = vld [vmem:[#allocation7 + $0x160] ss:$8 sps:$4 sm:$0xff]  }
  0xa8   : > { %v3897_v22 = vld [vmem:[#allocation7 + $0x44] ss:$8 sps:$4 sm:$0xff]  }
  0xa9   : > { %1282 = vmatpush1.bf16.msra.mxu0 %v3799_v37  ;;  %v3823_v37 = vld [vmem:[#allocation5 + $0x2c0] ss:$8 sps:$4 sm:$0xff]  }
  0xaa   : > { %1283 = vmatprep.subr.bf16.mxu0 %v3804_v42  ;;  %v3828_v42 = vld [vmem:[#allocation5 + $0x2b4] ss:$8 sps:$4 sm:$0xff]  }
  0xac   : > { %1102 = vmatmul.mubr.bf16.gmra.mxu0 %v437_v47  ;;  %v3826_v47 = vld [vmem:[#allocation5 + $0x2b0] ss:$8 sps:$4 sm:$0xff]  }
  0xad   : > { %1215 = vmatmul.mubr.bf16.gmra.mxu1 %v439_v48  ;;  %1284 = vmatpush1.bf16.msra.mxu0 %v3802_v49  ;;  %v461_v48 = vpack.c.bf16 %v407_v39, %v401_v38  ;;  %v463_v49 = vpack.c.bf16 %v409_v41, %v403_v40  ;;  %v3849_v38 = vld [vmem:[#allocation7 + $0x144] ss:$8 sps:$4 sm:$0xff]   ;;  %v3847_v40 = vld [vmem:[#allocation7 + $0x140] ss:$8 sps:$4 sm:$0xff]   ;;  %v3852_v41 = vld [vmem:[#allocation7 + $0x134] ss:$8 sps:$4 sm:$0xff]  }
  0xae   : > { %1111 = vmatprep.mubr.bf16.mxu0 %v444_v50  ;;  %1285 = vmatprep.subr.bf16.mxu0 %v3807_v51  ;;  %v3831_v50 = vld [vmem:[#allocation5 + $0x2a4] ss:$8 sps:$4 sm:$0xff]   ;;  %v468_v51 = vpack.c.bf16 %v420_v44, %v414_v43  ;;  %v399_v43 = vld [vmem:[%s4346_s13 + $0x230] sm:$0xff] }
  0xaf   : > { %1224 = vmatprep.mubr.bf16.mxu1 %v446_v52  ;;  %v470_v52 = vpack.c.bf16 %v422_v46, %v416_v45  ;;  %v3850_v44 = vld [vmem:[#allocation7 + $0x130] ss:$8 sps:$4 sm:$0xff]   ;;  %v406_v45 = vld [vmem:[%s4346_s13 + $0x268] sm:$0xff] }
  0xb0   : > { %v412_v46 = vld [vmem:[%s4346_s13 + $0x298] sm:$0xff] }
  0xb1   : > { %1286 = vmatpush1.bf16.msra.mxu0 %v3805_v53  ;;  %v3829_v53 = vld [vmem:[#allocation5 + $0x2a0] ss:$8 sps:$4 sm:$0xff]  }
  0xb2   : > { %1287 = vmatprep.subr.bf16.mxu0 %v3810_v58  ;;  %v3834_v58 = vld [vmem:[#allocation5 + $0x294] ss:$8 sps:$4 sm:$0xff]  }
  0xb4   : > { %1112 = vmatmul.mubr.bf16.gmra.mxu0 %v443_v63  ;;  %v469_v63 = vpack.c.bf16 %v421_v57, %v415_v56  ;;  %v424_v56 = vld [vmem:[%s4346_s13 + $0x2f8] sm:$0xff] }
  0xb5   : > { %1225 = vmatmul.mubr.bf16.gmra.mxu1 %v445_v0  ;;  %1288 = vmatpush1.bf16.msra.mxu0 %v3808_v1  ;;  %v3837_v0 = vld [vmem:[#allocation5 + $0x284] ss:$8 sps:$4 sm:$0xff]   ;;  %v430_v1 = vpack.c.bf16 %v340_v60, %v334_v59  ;;  %v472_v59 = vpack.c.bf16 %v424_v56, %v418_v55  ;;  %v3859_v60 = vld [vmem:[#allocation7 + $0x100] ss:$8 sps:$4 sm:$0xff]  }
  0xb6   : > { %1121 = vmatprep.mubr.bf16.mxu0 %v450_v2  ;;  %1289 = vmatprep.subr.bf16.mxu0 %v3813_v3  ;;  %v3835_v2 = vld [vmem:[#allocation5 + $0x280] ss:$8 sps:$4 sm:$0xff]  }
  0xb7   : > { %1234 = vmatprep.mubr.bf16.mxu1 %v452_v4  ;;  %v333_v3 = vld [vmem:[%s4346_s13 + $0x20] sm:$0xff]  ;;  %v339_v4 = vld [vmem:[%s4346_s13 + $0x50] sm:$0xff] }
  0xb8   : > { %v429_v7 = vpack.c.bf16 %v339_v4, %v333_v3  ;;  %v3865_v3 = vld [vmem:[#allocation7 + $0x1e0] ss:$8 sps:$4 sm:$0xff]   ;;  %v3870_v4 = vld [vmem:[#allocation7 + $0x1d4] ss:$8 sps:$4 sm:$0xff]  }
  0xb9   : > { %1290 = vmatpush1.bf16.msra.mxu0 %v3811_v5  ;;  %v346_v5 = vld [vmem:[%s4346_s13 + $0x88] sm:$0xff] }
  0xba   : > { %1291 = vmatprep.subr.bf16.mxu0 %v3816_v10  ;;  %v436_v8 = vpack.c.bf16 %v352_v6, %v346_v5  ;;  %v351_v10 = vld [vmem:[%s4346_s13 + $0xb0] sm:$0xff]  ;;  %v3873_v6 = vld [vmem:[#allocation7 + $0x1c4] ss:$8 sps:$4 sm:$0xff]   ;;  %v3931_v56 = vld [vmem:[#allocation7 + $0x80] ss:$8 sps:$4 sm:$0xff]  }
  0xbb   : > { %v435_v13 = vpack.c.bf16 %v351_v10, %v345_v9  ;;  %v3868_v5 = vld [vmem:[#allocation7 + $0x1d0] ss:$8 sps:$4 sm:$0xff]   ;;  %v3879_v10 = vld [vmem:[#allocation7 + $0x1a4] ss:$8 sps:$4 sm:$0xff]  }
  0xbc   : > { %1122 = vmatmul.mubr.bf16.gmra.mxu0 %v449_v15  ;;  %v357_v15 = vld [vmem:[%s4346_s13 + $0xe0] sm:$0xff]  ;;  %v3874_v9 = vld [vmem:[#allocation7 + $0x1b0] ss:$8 sps:$4 sm:$0xff]  }
  0xbd   : > { %1235 = vmatmul.mubr.bf16.gmra.mxu1 %v451_v16  ;;  %1292 = vmatpush2.bf16.msra.mxu0 %v3814_v17  ;;  %v363_v16 = vld [vmem:[%s4346_s13 + $0x110] sm:$0xff]  ;;  %v370_v17 = vld [vmem:[%s4346_s13 + $0x148] sm:$0xff] }
  0xbe   : > { %1131 = vmatprep.mubr.bf16.mxu0 %v456_v19  ;;  %1293 = vmatprep.subr.bf16.mxu0 %v3819_v18  ;;  %v376_v18 = vld [vmem:[%s4346_s13 + $0x178] sm:$0xff]  ;;  %v441_v19 = vpack.c.bf16 %v363_v16, %v357_v15  ;;  %v3888_v16 = vld [vmem:[#allocation7 + $0x184] ss:$8 sps:$4 sm:$0xff]  }
  0xbf   : > { %1244 = vmatprep.mubr.bf16.mxu1 %v458_v20  ;;  %v448_v20 = vpack.c.bf16 %v376_v18, %v370_v17  ;;  %v3883_v15 = vld [vmem:[#allocation7 + $0x70] ss:$8 sps:$4 sm:$0xff]   ;;  %v3886_v17 = vld [vmem:[#allocation7 + $0x180] ss:$8 sps:$4 sm:$0xff]   ;;  %v3891_v18 = vld [vmem:[#allocation7 + $0x64] ss:$8 sps:$4 sm:$0xff]  }
  0xc1   : > { %1294 = vmatpush2.bf16.msra.mxu0 %v3817_v21  ;;  %v3840_v21 = vld [vmem:[#allocation7 + $0x174] ss:$8 sps:$4 sm:$0xff]  }
  0xc2   : > { %1295 = vmatprep.subr.bf16.mxu0 %v3822_v26  ;;  %v388_v26 = vld [vmem:[%s4346_s13 + $0x1d8] sm:$0xff] }
  0xc3   : > { %v454_v29 = vpack.c.bf16 %v388_v26, %v382_v25  ;;  %v3898_v25 = vld [vmem:[#allocation7 + $0x30] ss:$8 sps:$4 sm:$0xff]   ;;  %v3903_v26 = vld [vmem:[#allocation7 + $0x24] ss:$8 sps:$4 sm:$0xff]  }
  0xc4   : > { %1132 = vmatmul.mubr.bf16.gmra.mxu0 %v455_v32  ;;  %v381_v32 = vld [vmem:[%s4346_s13 + $0x1a0] sm:$0xff] }
  0xc5   : > { %1245 = vmatmul.mubr.bf16.gmra.mxu1 %v457_v33  ;;  %1296 = vmatpush2.bf16.msra.mxu0 %v3820_v31  ;;  %v3846_v31 = vld [vmem:[#allocation7 + $0x154] ss:$8 sps:$4 sm:$0xff]  }
  0xc6   : > { %1141 = vmatprep.mubr.bf16.mxu0 %v462_v35  ;;  %1297 = vmatprep.subr.bf16.mxu0 %v3825_v34  ;;  %v387_v33 = vld [vmem:[%s4346_s13 + $0x1d0] sm:$0xff]  ;;  %v394_v35 = vld [vmem:[%s4346_s13 + $0x208] sm:$0xff] }
  0xc7   : > { %1254 = vmatprep.mubr.bf16.mxu1 %v464_v36  ;;  %v3844_v34 = vld [vmem:[#allocation7 + $0x150] ss:$8 sps:$4 sm:$0xff]  }
  0xc8   : > { %v400_v36 = vld [vmem:[%s4346_s13 + $0x238] sm:$0xff] }
  0xc9   : > { %1298 = vmatpush2.bf16.msra.mxu0 %v3823_v37  ;;  %v453_v37 = vpack.c.bf16 %v387_v33, %v381_v32  ;;  %v460_v39 = vpack.c.bf16 %v400_v36, %v394_v35  ;;  %v3912_v32 = vld [vmem:[#allocation7 + $0xf4] ss:$8 sps:$4 sm:$0xff]   ;;  %v3910_v33 = vld [vmem:[#allocation7 + $0xf0] ss:$8 sps:$4 sm:$0xff]   ;;  %v3913_v35 = vld [vmem:[#allocation7 + $0xe0] ss:$8 sps:$4 sm:$0xff]  }
  0xca   : > { %1299 = vmatprep.subr.bf16.mxu0 %v3828_v42  ;;  %v393_v42 = vld [vmem:[%s4346_s13 + $0x200] sm:$0xff]  ;;  %v3918_v36 = vld [vmem:[#allocation7 + $0xd4] ss:$8 sps:$4 sm:$0xff]  }
  0xcc   : > { %1142 = vmatmul.mubr.bf16.gmra.mxu0 %v461_v48  ;;  %v3855_v48 = vld [vmem:[#allocation7 + $0x124] ss:$8 sps:$4 sm:$0xff]  }
  0xcd   : > { %1255 = vmatmul.mubr.bf16.gmra.mxu1 %v463_v49  ;;  %1300 = vmatpush2.bf16.msra.mxu0 %v3826_v47  ;;  %v459_v47 = vpack.c.bf16 %v399_v43, %v393_v42  ;;  %v466_v49 = vpack.c.bf16 %v412_v46, %v406_v45 }
  0xce   : > { %1151 = vmatprep.mubr.bf16.mxu0 %v468_v51  ;;  %1301 = vmatprep.subr.bf16.mxu0 %v3831_v50  ;;  %v3853_v50 = vld [vmem:[#allocation7 + $0x120] ss:$8 sps:$4 sm:$0xff]   ;;  %v3858_v51 = vld [vmem:[#allocation7 + $0x114] ss:$8 sps:$4 sm:$0xff]  }
  0xcf   : > { %1264 = vmatprep.mubr.bf16.mxu1 %v470_v52  ;;  %v405_v52 = vld [vmem:[%s4346_s13 + $0x260] sm:$0xff] }
  0xd1   : > { %1302 = vmatpush2.bf16.msra.mxu0 %v3829_v53  ;;  %v411_v53 = vld [vmem:[%s4346_s13 + $0x290] sm:$0xff] }
  0xd2   : > { %1303 = vmatprep.subr.bf16.mxu0 %v3834_v58  ;;  %v465_v57 = vpack.c.bf16 %v411_v53, %v405_v52  ;;  %v3861_v58 = vld [vmem:[#allocation7 + $0x104] ss:$8 sps:$4 sm:$0xff]   ;;  %v3928_v53 = vld [vmem:[#allocation7 + $0x90] ss:$8 sps:$4 sm:$0xff]  }
  0xd4   : > { %1152 = vmatmul.mubr.bf16.gmra.mxu0 %v467_v62  ;;  %v417_v62 = vld [vmem:[%s4346_s13 + $0x2c0] sm:$0xff] }
  0xd5   : > { %1265 = vmatmul.mubr.bf16.gmra.mxu1 %v469_v63  ;;  %1304 = vmatpush2.bf16.msra.mxu0 %v3832_v61  ;;  %v3864_v61 = vld [vmem:[#allocation7 + $0x1f4] ss:$8 sps:$4 sm:$0xff]  }
  0xd6   : > { %1307 = vmatprep.mubr.bf16.mxu0 %v430_v1  ;;  %1305 = vmatprep.subr.bf16.mxu0 %v3837_v0  ;;  %v423_v63 = vld [vmem:[%s4346_s13 + $0x2f0] sm:$0xff] }
  0xd7   : > { %v3862_v0 = vld [vmem:[#allocation7 + $0x1f0] ss:$8 sps:$4 sm:$0xff]   ;;  %v471_v1 = vpack.c.bf16 %v423_v63, %v417_v62  ;;  %v3936_v62 = vld [vmem:[#allocation7 + $0x274] ss:$8 sps:$4 sm:$0xff]  }
  0xd9   : > { %1306 = vmatpush2.bf16.msra.mxu0 %v3835_v2  ;;  %v3867_v2 = vld [vmem:[#allocation7 + $0x1e4] ss:$8 sps:$4 sm:$0xff]  }
  0xda   : > { %2744 = vmatprep.subr.bf16.mxu0 %v3840_v21  ;;  %v3892_v21 = vld [vmem:[#allocation7 + $0x50] ss:$8 sps:$4 sm:$0xff]  }
  0xdc   : > { %1308 = vmatmul.mubr.bf16.vlgmr.msra.gmra.mxu0 %v429_v7  ;;  %v3871_v7 = vld [vmem:[#allocation7 + $0x1c0] ss:$8 sps:$4 sm:$0xff]  }
  0xdd   : > { %1317 = vmatprep.mubr.bf16.mxu0 %v436_v8  ;;  %2745 = vmatpush1.bf16.msra.mxu0 %v3838_v24  ;;  %v3876_v8 = vld [vmem:[#allocation7 + $0x1b4] ss:$8 sps:$4 sm:$0xff]  }
  0xde   : > { %2746 = vmatprep.subr.bf16.mxu0 %v3843_v28  ;;  %v3900_v24 = vld [vmem:[#allocation7 + $0x34] ss:$8 sps:$4 sm:$0xff]  }
  0xdf   : > { %v3906_v28 = vld [vmem:[#allocation7 + $0x14] ss:$8 sps:$4 sm:$0xff]  }
  0xe1   : > { %2747 = vmatpush1.bf16.msra.mxu0 %v3841_v30  ;;  %v3909_v30 = vld [vmem:[#allocation7 + $0x4] ss:$8 sps:$4 sm:$0xff]  }
  0xe2   : > { %2748 = vmatprep.subr.bf16.mxu0 %v3846_v31  ;;  %v3907_v31 = vld [vmem:[#allocation7] ss:$8 sps:$4 sm:$0xff]  }
  0xe4   : > { %1318 = vmatmul.mubr.bf16.gmra.mxu0 %v435_v13  ;;  %v3880_v13 = vld [vmem:[#allocation7 + $0x190] ss:$8 sps:$4 sm:$0xff]  }
  0xe5   : > { %1327 = vmatprep.mubr.bf16.mxu0 %v442_v14  ;;  %2749 = vmatpush1.bf16.msra.mxu0 %v3844_v34  ;;  %v3885_v14 = vld [vmem:[#allocation7 + $0x74] ss:$8 sps:$4 sm:$0xff]   ;;  %v3915_v34 = vld [vmem:[#allocation7 + $0xe4] ss:$8 sps:$4 sm:$0xff]  }
  0xe6   : > { %2750 = vmatprep.subr.bf16.mxu0 %v3849_v38  ;;  %2631 = vmatprep.subr.bf16.mxu1 %v3885_v14  ;;  %v3921_v38 = vld [vmem:[#allocation7 + $0xc4] ss:$8 sps:$4 sm:$0xff]  }
  0xe7   : > { %2632 = vmatpush1.bf16.msra.mxu1 %v3883_v15 }
  0xe8   : > { %2633 = vmatprep.subr.bf16.mxu1 %v3891_v18 }
  0xe9   : > { %2751 = vmatpush1.bf16.msra.mxu0 %v3847_v40  ;;  %v3924_v40 = vld [vmem:[#allocation7 + $0xb4] ss:$8 sps:$4 sm:$0xff]  }
  0xea   : > { %2752 = vmatprep.subr.bf16.mxu0 %v3852_v41  ;;  %v3922_v41 = vld [vmem:[#allocation7 + $0xb0] ss:$8 sps:$4 sm:$0xff]  }
  0xec   : > { %1328 = vmatmul.mubr.bf16.gmra.mxu0 %v441_v19  ;;  %v3889_v19 = vld [vmem:[#allocation7 + $0x60] ss:$8 sps:$4 sm:$0xff]  }
  0xed   : > { %1337 = vmatprep.mubr.bf16.mxu0 %v448_v20  ;;  %2753 = vmatpush1.bf16.msra.mxu0 %v3850_v44  ;;  %v3894_v20 = vld [vmem:[#allocation7 + $0x54] ss:$8 sps:$4 sm:$0xff]   ;;  %v3927_v44 = vld [vmem:[#allocation7 + $0xa4] ss:$8 sps:$4 sm:$0xff]  }
  0xee   : > { %2754 = vmatprep.subr.bf16.mxu0 %v3855_v48  ;;  %2634 = vmatpush1.bf16.msra.mxu1 %v3889_v19 }
  0xef   : > { %2635 = vmatprep.subr.bf16.mxu1 %v3894_v20 }
  0xf1   : > { %2755 = vmatpush1.bf16.msra.mxu0 %v3853_v50  ;;  %v3930_v50 = vld [vmem:[#allocation7 + $0x94] ss:$8 sps:$4 sm:$0xff]  }
  0xf2   : > { %2756 = vmatprep.subr.bf16.mxu0 %v3858_v51  ;;  %2636 = vmatpush1.bf16.msra.mxu1 %v3892_v21 }
  0xf3   : > { %2637 = vmatprep.subr.bf16.mxu1 %v3897_v22 }
  0xf4   : > { %1338 = vmatmul.mubr.bf16.gmra.mxu0 %v447_v27  ;;  %v3901_v27 = vld [vmem:[#allocation7 + $0x20] ss:$8 sps:$4 sm:$0xff]  }
  0xf5   : > { %1347 = vmatprep.mubr.bf16.mxu0 %v454_v29  ;;  %2757 = vmatpush1.bf16.msra.mxu0 %v3856_v54  ;;  %v3904_v29 = vld [vmem:[#allocation7 + $0x10] ss:$8 sps:$4 sm:$0xff]  }
  0xf6   : > { %2758 = vmatprep.subr.bf16.mxu0 %v3861_v58  ;;  %2638 = vmatpush1.bf16.msra.mxu1 %v3895_v23 }
  0xf7   : > { %2639 = vmatprep.subr.bf16.mxu1 %v3900_v24 }
  0xf9   : > { %2759 = vmatpush1.bf16.msra.mxu0 %v3859_v60 }
  0xfa   : > { %2760 = vmatprep.subr.bf16.mxu0 %v3864_v61  ;;  %2640 = vmatpush1.bf16.msra.mxu1 %v3898_v25 }
  0xfb   : > { %2641 = vmatprep.subr.bf16.mxu1 %v3903_v26 }
  0xfc   : > { %1348 = vmatmul.mubr.bf16.gmra.mxu0 %v453_v37  ;;  %v3916_v37 = vld [vmem:[#allocation7 + $0xd0] ss:$8 sps:$4 sm:$0xff]  }
  0xfd   : > { %1357 = vmatprep.mubr.bf16.mxu0 %v460_v39  ;;  %2761 = vmatpush2.bf16.msra.mxu0 %v3862_v0  ;;  %v3919_v39 = vld [vmem:[#allocation7 + $0xc0] ss:$8 sps:$4 sm:$0xff]  }
  0xfe   : > { %2762 = vmatprep.subr.bf16.mxu0 %v3867_v2  ;;  %2642 = vmatpush1.bf16.msra.mxu1 %v3901_v27 }
  0xff   : > { %2643 = vmatprep.subr.bf16.mxu1 %v3906_v28  ;;  %v1390_v28 = vlaneseq }
 0x101   : > { %2763 = vmatpush2.bf16.msra.mxu0 %v3865_v3 }
 0x102   : > { %2764 = vmatprep.subr.bf16.mxu0 %v3870_v4  ;;  %2644 = vmatpush1.bf16.msra.mxu1 %v3904_v29 }
 0x103   : > { %2645 = vmatprep.subr.bf16.mxu1 %v3909_v30 }
 0x104   : > { %1358 = vmatmul.mubr.bf16.gmra.mxu0 %v459_v47  ;;  %v3925_v47 = vld [vmem:[#allocation7 + $0xa0] ss:$8 sps:$4 sm:$0xff]  }
 0x105   : > { %1367 = vmatprep.mubr.bf16.mxu0 %v466_v49  ;;  %2765 = vmatpush2.bf16.msra.mxu0 %v3868_v5 }
 0x106   : > { %2766 = vmatprep.subr.bf16.mxu0 %v3873_v6  ;;  %2646 = vmatpush1.bf16.msra.mxu1 %v3907_v31 }
 0x107   : > { %2647 = vmatprep.subr.bf16.mxu1 %v3912_v32  ;;  %v4544_v32 = vshrl.u32 %v1390_v28, 7 }
 0x109   : > { %2767 = vmatpush2.bf16.msra.mxu0 %v3871_v7  ;;  %vm1749_vm0 = vcmp.lt.s32.totalorder %v4544_v32, 1  ;;  %vm1814_vm1 = vcmp.lt.s32.totalorder %v4544_v32, 7 }
 0x10a   : > { %2768 = vmatprep.subr.bf16.mxu0 %v3876_v8  ;;  %2648 = vmatpush2.bf16.msra.mxu1 %v3910_v33 }
 0x10b   : > { %2649 = vmatprep.subr.bf16.mxu1 %v3915_v34 }
 0x10c   : > { %1368 = vmatmul.mubr.bf16.gmra.mxu0 %v465_v57  ;;  %v3933_v57 = vld [vmem:[#allocation7 + $0x84] ss:$8 sps:$4 sm:$0xff]  }
 0x10d   : > { %1377 = vmatprep.mubr.bf16.mxu0 %v472_v59  ;;  %2769 = vmatpush2.bf16.msra.mxu0 %v3874_v9 }
 0x10e   : > { %2770 = vmatprep.subr.bf16.mxu0 %v3879_v10  ;;  %2650 = vmatpush2.bf16.msra.mxu1 %v3913_v35 }
 0x10f   : > { %2651 = vmatprep.subr.bf16.mxu1 %v3918_v36  ;;  %v4553_v36 = vsub.s32 0, %v4544_v32 }
 0x111   : > { %2771 = vmatpush2.bf16.msra.mxu0 %v3877_v11  ;;  %5837 = vst [vmem:[#allocation15_spill] sm:$0xff] %v4553_v36 }
 0x112   : > { %2772 = vmatprep.subr.bf16.mxu0 %v3882_v12  ;;  %2652 = vmatpush2.bf16.msra.mxu1 %v3916_v37 }
 0x113   : > { %2653 = vmatprep.subr.bf16.mxu1 %v3921_v38  ;;  %v1388_v38 = vld [vmem:[%s5789_s2] sm:$0x3] }
 0x114   : > { %1378 = vmatmul.mubr.bf16.gmra.mxu0 %v471_v1 }
 0x115   : > { %2773 = vmatpush2.bf16.msra.mxu0 %v3880_v13 }
 0x116   : > { %2774 = vmatprep.subr.bf16.mxu0 %v3888_v16  ;;  %2654 = vmatpush2.bf16.msra.mxu1 %v3919_v39 }
 0x117   : > { %2655 = vmatprep.subr.bf16.mxu1 %v3924_v40 }
 0x119   : > { %2775 = vmatpush2.bf16.msra.mxu0 %v3886_v17 }
 0x11a   : > { %2656 = vmatpush2.bf16.msra.mxu1 %v3922_v41  ;;  %v1432_v41 = vld [vmem:[%s5790_s3] sm:$0x3] }
 0x11b   : > { %2657 = vmatprep.subr.bf16.mxu1 %v3927_v44  ;;  %v4580_v28 = vrot.slane %v1432_v41, %v4553_v36 }
 0x11e   : > { %2658 = vmatpush2.bf16.msra.mxu1 %v3925_v47  ;;  %v4570_v47 = vrot.slane %v1388_v38, %v4553_v36 }
 0x11f   : > { %2659 = vmatprep.subr.bf16.mxu1 %v3930_v50  ;;  %v4573_v50 = vsub.s32 1, %v4544_v32 }
 0x121   : > { %5840 = vst [vmem:[#allocation18_spill] sm:$0xff] %v4573_v50 }
 0x122   : > { %2660 = vmatpush2.bf16.msra.mxu1 %v3928_v53 }
 0x123   : > { %2661 = vmatprep.subr.bf16.mxu1 %v3933_v57 }
 0x126   : > { %2662 = vmatpush2.bf16.msra.mxu1 %v3931_v56 }
 0x127   : > { %2857 = vmatprep.subr.bf16.mxu1 %v3936_v62 }
 0x15c   : > { %v4452_v42 = vpop.f32.mrf.mxu0 }
 0x15d   : > { %v4454_v43 = vpop.f32.mrf.mxu1 }
 0x15e   : > { %v4456_v45 = vpop.f32.mrf.mxu0  ;;  %v1197_v44 = vadd.f32 %v4454_v43, %v4452_v42 }
 0x15f   : > { %v4458_v46 = vpop.f32.mrf.mxu1 }
 0x160   : > { %v4460_v48 = vpop.f32.mrf.mxu0  ;;  %v1199_v56 = vadd.f32 %v4458_v46, %v4456_v45 }
 0x161   : > { %v4462_v49 = vpop.f32.mrf.mxu1 }
 0x162   : > { %v4464_v51 = vpop.f32.mrf.mxu0  ;;  %v1201_v42 = vadd.f32 %v4462_v49, %v4460_v48  ;;  %v4595_v48 = vrot.slane %v1432_v41, %v4573_v50 }
 0x163   : > { %v4466_v52 = vpop.f32.mrf.mxu1 }
 0x164   : > { %v4468_v54 = vpop.f32.mrf.mxu0  ;;  %v1203_v45 = vadd.f32 %v4466_v52, %v4464_v51 }
 0x165   : > { %v4470_v55 = vpop.f32.mrf.mxu1 }
 0x166   : > { %v4472_v58 = vpop.f32.mrf.mxu0 }
 0x167   : > { %v4474_v59 = vpop.f32.mrf.mxu1 }
 0x168   : > { %v4476_v60 = vpop.f32.mrf.mxu0  ;;  %v1209_v52 = vadd.f32 %v4474_v59, %v4472_v58 }
 0x169   : > { %v4478_v61 = vpop.f32.mrf.mxu1 }
 0x16a   : > { %v4480_v63 = vpop.f32.mrf.mxu0 }
 0x16b   : > { %v4482_v0 = vpop.f32.mrf.mxu1 }
 0x16c   : > { %v4484_v1 = vpop.f32.mrf.mxu0  ;;  %v1213_v41 = vadd.f32 %v4482_v0, %v4480_v63 }
 0x16d   : > { %v4486_v2 = vpop.f32.mrf.mxu1 }
 0x16e   : > { %v4488_v3 = vpop.f32.mrf.mxu0 }
 0x16f   : > { %v4492_v5 = vpop.f32.mrf.mxu1 }
 0x170   : > { %v4490_v4 = vpop.f32.mrf.mxu0 }
 0x171   : > { %v4498_v8 = vpop.f32.mrf.mxu1 }
 0x172   : > { %v4494_v6 = vpop.f32.mrf.mxu0 }
 0x173   : > { %v4504_v11 = vpop.f32.mrf.mxu1 }
 0x174   : > { %v4496_v7 = vpop.f32.mrf.mxu0 }
 0x175   : > { %v4510_v14 = vpop.f32.mrf.mxu1 }
 0x176   : > { %v4500_v9 = vpop.f32.mrf.mxu0 }
 0x177   : > { %v4516_v17 = vpop.f32.mrf.mxu1 }
 0x178   : > { %v4502_v10 = vpop.f32.mrf.mxu0 }
 0x179   : > { %v4522_v20 = vpop.f32.mrf.mxu1 }
 0x17a   : > { %v4506_v12 = vpop.f32.mrf.mxu0 }
 0x17b   : > { %v4528_v23 = vpop.f32.mrf.mxu1 }
 0x17c   : > { %v4508_v13 = vpop.f32.mrf.mxu0 }
 0x17d   : > { %v4534_v26 = vpop.f32.mrf.mxu1 }
 0x17e   : > { %v4512_v15 = vpop.f32.mrf.mxu0 }
 0x17f   : > { %v4540_v30 = vpop.f32.mrf.mxu1 }
 0x180   : > { %v4514_v16 = vpop.f32.mrf.mxu0 }
 0x181   : > { %v4548_v34 = vpop.f32.mrf.mxu1 }
 0x182   : > { %v4518_v18 = vpop.f32.mrf.mxu0 }
 0x183   : > { %v4560_v39 = vpop.f32.mrf.mxu1 }
 0x184   : > { %v4520_v19 = vpop.f32.mrf.mxu0 }
 0x185   : > { %v4577_v57 = vpop.f32.mrf.mxu1 }
 0x186   : > { %v4524_v21 = vpop.f32.mrf.mxu0 }
 0x187   : > { %v4590_v46 = vpop.f32.mrf.mxu1 }
 0x188   : > { %v4526_v22 = vpop.f32.mrf.mxu0 }
 0x18a   : > { %v4530_v24 = vpop.f32.mrf.mxu0 }
 0x18c   : > { %v4532_v25 = vpop.f32.mrf.mxu0 }
 0x18e   : > { %v4536_v27 = vpop.f32.mrf.mxu0 }
 0x190   : > { %v4538_v29 = vpop.f32.mrf.mxu0 }
 0x192   : > { %v4542_v31 = vpop.f32.mrf.mxu0 }
 0x193   : > { %5834 = vst [vmem:[#allocation12_spill] sm:$0xff] %v4542_v31 }
 0x194   : > { %v4546_v33 = vpop.f32.mrf.mxu0 }
 0x195   : > { %5835 = vst [vmem:[#allocation13_spill] sm:$0xff] %v4546_v33 }
 0x196   : > { %v4550_v35 = vpop.f32.mrf.mxu0 }
 0x197   : > { %5836 = vst [vmem:[#allocation14_spill] sm:$0xff] %v4550_v35  ;;  %v4586_v35 = vrot.slane %v1388_v38, %v4573_v50  ;;  %v1207_v38 = vadd.f32 %v4470_v55, %v4468_v54 }
 0x198   : > { %v4555_v37 = vpop.f32.mrf.mxu0 }
 0x199   : > { %5838 = vst [vmem:[#allocation16_spill] sm:$0xff] %v4555_v37 }
 0x19a   : > { %v4562_v40 = vpop.f32.mrf.mxu0 }
 0x19b   : > { %5839 = vst [vmem:[#allocation17_spill] sm:$0xff] %v4562_v40 }
 0x19c   : > { %v1309_v53 = vpop.f32.mrf.mxu0 }
 0x19d   : > { %v1310_v62 = vadd.f32 %v1309_v53, %v1197_v44 }
 0x19e   : > { %v1311_v40 = vpop.f32.mrf.mxu0 }
 0x19f   : > { %v1400_v43 = vmul.f32 %v4570_v47, %v1310_v62  ;;  %v1312_v37 = vadd.f32 %v1311_v40, %v1199_v56  ;;  %v4604_v62 = vpop.f32.mrf.mxu1 }
 0x1a0   : > { %v1313_v33 = vpop.f32.mrf.mxu0 }
 0x1a1   : > { %v1444_v44 = vadd.f32 %v4580_v28, %v1400_v43  ;;  %v1314_v53 = vadd.f32 %v1313_v33, %v1201_v42  ;;  %v1401_v31 = vmul.f32 %v4586_v35, %v1312_v37  ;;  %v1211_v37 = vadd.f32 %v4478_v61, %v4476_v60 }
 0x1a2   : > { %v1315_v36 = vpop.f32.mrf.mxu0  ;;  %v1217_v43 = vadd.f32 %v4486_v2, %v4484_v1 }
 0x1a3   : > { %v1402_v49 = vmul.f32 %v4570_v47, %v1314_v53  ;;  %v1316_v40 = vadd.f32 %v1315_v36, %v1203_v45  ;;  %v4600_v56 = vmax.f32 %v1444_v44, 0.0  ;;  %v1445_v58 = vadd.f32 %v4595_v48, %v1401_v31  ;;  %v4620_v53 = vpop.f32.mrf.mxu1 }
 0x1a4   : > { %v1319_v51 = vpop.f32.mrf.mxu0 }
 0x1a5   : > { %v1446_v33 = vadd.f32 %v4580_v28, %v1402_v49  ;;  %v1403_v36 = vmul.f32 %v4586_v35, %v1316_v40  ;;  %v1320_v54 = vadd.f32 %v1319_v51, %v1207_v38  ;;  %v5802_v45 = vrot.slane %v4600_v56, 7 }
 0x1a6   : > { %v1321_v55 = vpop.f32.mrf.mxu0  ;;  %v5801_v49 = vrot.slane %v4600_v56, 1 }
 0x1a7   : > { %v1478_v59 = vmax.f32 %v1446_v33, 0.0  ;;  %v1322_v42 = vadd.f32 %v1321_v55, %v1209_v52  ;;  %v1447_v60 = vadd.f32 %v4595_v48, %v1403_v36  ;;  %v1404_v61 = vmul.f32 %v4570_v47, %v1320_v54 }
 0x1a8   : > { %v1323_v44 = vpop.f32.mrf.mxu0  ;;  %v4628_v52 = vmax.f32 %v1445_v58, 0.0  ;;  %v1219_v58 = vadd.f32 %v4492_v5, %v4488_v3  ;;  %v1221_v3 = vadd.f32 %v4498_v8, %v4490_v4  ;;  %v1223_v5 = vadd.f32 %v4504_v11, %v4494_v6 }
 0x1a9   : > { %v1719_v40 = vrot.slane %v1478_v59, 7  ;;  %v1784_v63 = vrot.slane %v1478_v59, 1  ;;  %v1943_v0 = vpack.c.bf16 %v1478_v59, %v4600_v56  ;;  %v4624_v31 = vmax.f32 %v1447_v60, 0.0 }
 0x1aa   : > { %v1448_v38 = vadd.f32 %v4580_v28, %v1404_v61  ;;  %v1405_v1 = vmul.f32 %v4586_v35, %v1322_v42  ;;  %v1324_v2 = vadd.f32 %v1323_v44, %v1211_v37  ;;  %v1325_v51 = vpop.f32.mrf.mxu0  ;;  %v4647_v42 = vpop.f32.mrf.mxu1 }
 0x1ab   : > { %v4634_v33 = vsel %vm1749_vm0, %v5802_v45, %v1719_v40  ;;  %v4640_v36 = vsel %vm1814_vm1, %v5801_v49, %v1784_v63  ;;  %v1326_v54 = vadd.f32 %v1325_v51, %v1213_v41  ;;  %v1944_v44 = vpack.c.bf16 %v4624_v31, %v4628_v52 }
 0x1ac   : > { %5841 = vst [vmem:[#allocation19_spill] sm:$0xff] %v4640_v36  ;;  %v4642_v55 = vmax.f32 %v1448_v38, 0.0  ;;  %v1406_v37 = vmul.f32 %v4570_v47, %v1324_v2  ;;  %v1329_v59 = vpop.f32.mrf.mxu0  ;;  %v1449_v38 = vadd.f32 %v4595_v48, %v1405_v1  ;;  %v4674_v6 = vpop.f32.mrf.mxu1 }
 0x1ad   : > { %v1407_v60 = vmul.f32 %v4586_v35, %v1326_v54  ;;  %v1330_v61 = vadd.f32 %v1329_v59, %v1217_v43  ;;  %2776 = vmatprep.mubr.bf16.mxu0 %v1944_v44 }
 0x1ae   : > { %v1721_v49 = vrot.slane %v4642_v55, 7  ;;  %v5803_v41 = vrot.slane %v4642_v55, 1  ;;  %v1450_v2 = vadd.f32 %v4580_v28, %v1406_v37  ;;  %v1331_v51 = vpop.f32.mrf.mxu0  ;;  %2777 = vmatmul.mubr.bf16.vlgmr.msra.gmra.mxu0 %v1943_v0 }
 0x1af   : > { %v1451_v43 = vadd.f32 %v4595_v48, %v1407_v60  ;;  %v1408_v54 = vmul.f32 %v4570_v47, %v1330_v61  ;;  %v1332_v37 = vadd.f32 %v1331_v51, %v1219_v58  ;;  %v4681_v61 = vmax.f32 %v1449_v38, 0.0 }
 0x1b0   : > { %v4666_v59 = vsel %vm1814_vm1, %v1784_v63, %v5803_v41  ;;  %v4668_v1 = vmax.f32 %v1450_v2, 0.0  ;;  %v1333_v45 = vpop.f32.mrf.mxu0  ;;  %v4672_v4 = vsel %vm1749_vm0, %v1719_v40, %v1721_v49  ;;  %v1227_v2 = vadd.f32 %v4510_v14, %v4496_v7 }
 0x1b1   : > { %5842 = vst [vmem:[#allocation20_spill] sm:$0xff] %v4666_v59  ;;  %v4678_v11 = vmax.f32 %v1451_v43, 0.0  ;;  %v1452_v60 = vadd.f32 %v4580_v28, %v1408_v54  ;;  %v1334_v63 = vadd.f32 %v1333_v45, %v1221_v3  ;;  %v1409_v0 = vmul.f32 %v4586_v35, %v1332_v37  ;;  %v4694_v3 = vpop.f32.mrf.mxu1 }
 0x1b2   : > { %v1723_v58 = vrot.slane %v4668_v1, 7  ;;  %v1335_v44 = vpop.f32.mrf.mxu0  ;;  %v1945_v40 = vpack.c.bf16 %v4668_v1, %v4642_v55  ;;  %v1229_v43 = vadd.f32 %v4516_v17, %v4500_v9  ;;  %v4702_v9 = vadd.s32 16, %v4544_v32 }
 0x1b3   : > { %v1410_v51 = vmul.f32 %v4570_v47, %v1334_v63  ;;  %v1336_v54 = vadd.f32 %v1335_v44, %v1223_v5  ;;  %v1946_v38 = vpack.c.bf16 %v4678_v11, %v4681_v61  ;;  %v4696_v37 = vmax.f32 %v1452_v60, 0.0 }
 0x1b4   : > { %v1339_v45 = vpop.f32.mrf.mxu0  ;;  %v1453_v8 = vadd.f32 %v4595_v48, %v1409_v0  ;;  %v4706_v17 = vsel %vm1749_vm0, %v1721_v49, %v1723_v58  ;;  %v4712_v0 = vadd.s32 32, %v4544_v32  ;;  %v1231_v44 = vadd.f32 %v4522_v20, %v4502_v10 }
 0x1b5   : > { %v1454_v41 = vadd.f32 %v4580_v28, %v1410_v51  ;;  %v1340_v50 = vadd.f32 %v1339_v45, %v1227_v2  ;;  %v1411_v7 = vmul.f32 %v4586_v35, %v1336_v54  ;;  %2786 = vmatprep.mubr.bf16.mxu0 %v1946_v38  ;;  %v1233_v2 = vadd.f32 %v4528_v23, %v4506_v12 }
 0x1b6   : > { %v1341_v14 = vpop.f32.mrf.mxu0  ;;  %2787 = vmatmul.mubr.bf16.gmra.mxu0 %v1945_v40 }
 0x1b7   : > { %v4708_v5 = vmax.f32 %v1454_v41, 0.0  ;;  %v1412_v60 = vmul.f32 %v4570_v47, %v1340_v50  ;;  %v1342_v63 = vadd.f32 %v1341_v14, %v1229_v43  ;;  %v1455_v51 = vadd.f32 %v4595_v48, %v1411_v7  ;;  %v4721_v41 = vpop.f32.mrf.mxu1 }
 0x1b8   : > { %v1343_v54 = vpop.f32.mrf.mxu0  ;;  %v1725_v50 = vrot.slane %v4696_v37, 7  ;;  %v4724_v43 = vmax.f32 %v1453_v8, 0.0 }
 0x1b9   : > { %v5806_v45 = vrot.slane %v4708_v5, 7  ;;  %v1456_v10 = vadd.f32 %v4580_v28, %v1412_v60  ;;  %v4728_v20 = vmax.f32 %v1455_v51, 0.0  ;;  %v1413_v12 = vmul.f32 %v4586_v35, %v1342_v63 }
 0x1ba   : > { %v1344_v23 = vadd.f32 %v1343_v54, %v1231_v44  ;;  %v1345_v40 = vpop.f32.mrf.mxu0  ;;  %v1947_v38 = vpack.c.bf16 %v4708_v5, %v4696_v37  ;;  %v1237_v60 = vadd.f32 %v4534_v26, %v4508_v13  ;;  %v4758_v54 = vsel %vm1749_vm0, %v1723_v58, %v1725_v50 }
 0x1bb   : > { %v1346_v7 = vadd.f32 %v1345_v40, %v1233_v2  ;;  %v4738_v8 = vsel %vm1749_vm0, %v1725_v50, %v5806_v45  ;;  %v1948_v44 = vpack.c.bf16 %v4728_v20, %v4724_v43  ;;  %v1239_v2 = vadd.f32 %v4540_v30, %v4512_v15  ;;  %v4748_v40 = vpop.f32.mrf.mxu1 }
 0x1bc   : > { %v1414_v51 = vmul.f32 %v4570_v47, %v1344_v23  ;;  %v1349_v63 = vpop.f32.mrf.mxu0  ;;  %v4750_v49 = vmax.f32 %v1456_v10, 0.0  ;;  %v1457_v13 = vadd.f32 %v4595_v48, %v1413_v12  ;;  %v1241_v15 = vadd.f32 %v4548_v34, %v4514_v16 }
 0x1bd   : > { %v1415_v14 = vmul.f32 %v4586_v35, %v1346_v7  ;;  %v1350_v23 = vadd.f32 %v1349_v63, %v1237_v60  ;;  %2796 = vmatprep.mubr.bf16.mxu0 %v1948_v44  ;;  %v4764_v7 = vadd.s32 48, %v4544_v32  ;;  %v1243_v12 = vadd.f32 %v4560_v39, %v4518_v18  ;;  %v1268_v50 = vpop.f32.mrf.mxu1 }
 0x1be   : > { %v1458_v26 = vadd.f32 %v4580_v28, %v1414_v51  ;;  %v1351_v36 = vpop.f32.mrf.mxu0  ;;  %2797 = vmatmul.mubr.bf16.gmra.mxu0 %v1947_v38  ;;  %v1729_v16 = vrot.slane %v4750_v49, 7  ;;  %v4777_v44 = vmax.f32 %v1457_v13, 0.0  ;;  %v1720_v45 = vrot.slane %v4624_v31, 7 }
 0x1bf   : > { %v1459_v30 = vadd.f32 %v4595_v48, %v1415_v14  ;;  %v1352_v10 = vadd.f32 %v1351_v36, %v1239_v2  ;;  %v1416_v60 = vmul.f32 %v4570_v47, %v1350_v23  ;;  %v1249_v23 = vadd.f32 %v4590_v46, %v4524_v21  ;;  %v1270_v21 = vpop.f32.mrf.mxu1 }
 0x1c0   : > { %v4768_v51 = vmax.f32 %v1458_v26, 0.0  ;;  %v1353_v63 = vpop.f32.mrf.mxu0  ;;  %v1247_v26 = vadd.f32 %v4577_v57, %v4520_v19  ;;  %v1253_v19 = vadd.f32 %v4620_v53, %v4530_v24  ;;  %v1261_v24 = vadd.f32 %v4694_v3, %v4538_v29  ;;  %v5843_v53 = vld [vmem:[#allocation12_spill] sm:$0xff] }
 0x1c1   : > { %v4774_v34 = vmax.f32 %v1459_v30, 0.0  ;;  %v1417_v36 = vmul.f32 %v4586_v35, %v1352_v10  ;;  %v1354_v14 = vadd.f32 %v1353_v63, %v1241_v15  ;;  %v1460_v39 = vadd.f32 %v4580_v28, %v1416_v60  ;;  %v1272_v3 = vpop.f32.mrf.mxu1 }
 0x1c2   : > { %v1731_v18 = vrot.slane %v4768_v51, 7  ;;  %v1355_v2 = vpop.f32.mrf.mxu0  ;;  %v1949_v38 = vpack.c.bf16 %v4768_v51, %v4750_v49  ;;  %v1251_v30 = vadd.f32 %v4604_v62, %v4526_v22  ;;  %v1257_v62 = vadd.f32 %v4647_v42, %v4532_v25 }
 0x1c3   : > { %v1418_v13 = vmul.f32 %v4570_v47, %v1354_v14  ;;  %v4790_v15 = vmax.f32 %v1460_v39, 0.0  ;;  %v1356_v10 = vadd.f32 %v1355_v2, %v1243_v12  ;;  %v1950_v60 = vpack.c.bf16 %v4774_v34, %v4777_v44 }
 0x1c4   : > { %v1359_v63 = vpop.f32.mrf.mxu0  ;;  %v4796_v58 = vsel %vm1749_vm0, %v1729_v16, %v1731_v18  ;;  %v1461_v57 = vadd.f32 %v4595_v48, %v1417_v36  ;;  %v1259_v12 = vadd.f32 %v4674_v6, %v4536_v27  ;;  %v1263_v36 = vadd.f32 %v4721_v41, %v5843_v53 }
 0x1c5   : > { %v1462_v22 = vadd.f32 %v4580_v28, %v1418_v13  ;;  %v1360_v46 = vadd.f32 %v1359_v63, %v1247_v26  ;;  %v1733_v14 = vrot.slane %v4790_v15, 7  ;;  %v1419_v39 = vmul.f32 %v4586_v35, %v1356_v10  ;;  %2806 = vmatprep.mubr.bf16.mxu0 %v1950_v60 }
 0x1c6   : > { %v1361_v2 = vpop.f32.mrf.mxu0  ;;  %2807 = vmatmul.mubr.bf16.gmra.mxu0 %v1949_v38  ;;  %v5844_v6 = vrot.slane %v4708_v5, 7  ;;  %v4826_v41 = vmax.f32 %v1461_v57, 0.0 }
 0x1c7   : > { %v4812_v13 = vmax.f32 %v1462_v22, 0.0  ;;  %v1420_v26 = vmul.f32 %v4570_v47, %v1360_v46  ;;  %v1463_v25 = vadd.f32 %v4595_v48, %v1419_v39  ;;  %v1362_v42 = vadd.f32 %v1361_v2, %v1249_v23  ;;  %v5847_v39 = vld [vmem:[#allocation13_spill] sm:$0xff]  ;;  %v5848_v2 = vld [vmem:[#allocation14_spill] sm:$0xff] }
 0x1c8   : > { %v1363_v27 = vpop.f32.mrf.mxu0  ;;  %v4820_v10 = vsel %vm1749_vm0, %v5844_v6, %v1729_v16  ;;  %v4824_v29 = vsel %vm1749_vm0, %v1731_v18, %v1733_v14  ;;  %v1267_v57 = vadd.f32 %v4748_v40, %v5847_v39  ;;  %v1269_v53 = vadd.f32 %v1268_v50, %v5848_v2 }
 0x1c9   : > { %5845 = vst [vmem:[#allocation12_spill] sm:$0xff] %v4820_v10  ;;  %5846 = vst [vmem:[#allocation21_spill] sm:$0xff] %v4824_v29  ;;  %v1464_v60 = vadd.f32 %v4580_v28, %v1420_v26  ;;  %v1364_v23 = vadd.f32 %v1363_v27, %v1251_v30  ;;  %v4830_v38 = vmax.f32 %v1463_v25, 0.0  ;;  %v1421_v22 = vmul.f32 %v4586_v35, %v1362_v42  ;;  %v5849_v30 = vld [vmem:[#allocation16_spill] sm:$0xff]  ;;  %v5850_v27 = vld [vmem:[#allocation17_spill] sm:$0xff] }
 0x1ca   : > { %v1365_v46 = vpop.f32.mrf.mxu0  ;;  %v1951_v16 = vpack.c.bf16 %v4812_v13, %v4790_v15  ;;  %v4842_v25 = vadd.f32 %v1270_v21, %v5849_v30  ;;  %v4845_v42 = vadd.f32 %v1272_v3, %v5850_v27  ;;  %v5809_v21 = vrot.slane %v4628_v52, 7 }
 0x1cb   : > { %v1422_v6 = vmul.f32 %v4570_v47, %v1364_v23  ;;  %v1366_v26 = vadd.f32 %v1365_v46, %v1253_v19  ;;  %v1952_v18 = vpack.c.bf16 %v4830_v38, %v4826_v41  ;;  %v4850_v59 = vmax.f32 %v1464_v60, 0.0 }
 0x1cc   : > { %v1369_v63 = vpop.f32.mrf.mxu0  ;;  %v1465_v40 = vadd.f32 %v4595_v48, %v1421_v22  ;;  %v5851_v39 = vrot.slane %v4812_v13, 7  ;;  %v1722_v30 = vrot.slane %v4681_v61, 7 }
 0x1cd   : > { %v1466_v50 = vadd.f32 %v4580_v28, %v1422_v6  ;;  %v1423_v19 = vmul.f32 %v4586_v35, %v1366_v26  ;;  %v1370_v3 = vadd.f32 %v1369_v63, %v1257_v62  ;;  %2816 = vmatprep.mubr.bf16.mxu0 %v1952_v18  ;;  %v4873_v63 = vsel %vm1749_vm0, %v5809_v21, %v1720_v45 }
 0x1ce   : > { %v1371_v46 = vpop.f32.mrf.mxu0  ;;  %v4861_v2 = vsel %vm1749_vm0, %v1733_v14, %v5851_v39  ;;  %2817 = vmatmul.mubr.bf16.gmra.mxu0 %v1951_v16  ;;  %v1737_v18 = vrot.slane %v4850_v59, 7 }
 0x1cf   : > { %5852 = vst [vmem:[#allocation13_spill] sm:$0xff] %v4861_v2  ;;  %v4864_v22 = vmax.f32 %v1466_v50, 0.0  ;;  %v1467_v6 = vadd.f32 %v4595_v48, %v1423_v19  ;;  %v1372_v26 = vadd.f32 %v1371_v46, %v1259_v12  ;;  %v1424_v27 = vmul.f32 %v4570_v47, %v1370_v3 }
 0x1d0   : > { %v1373_v62 = vpop.f32.mrf.mxu0  ;;  %v4878_v50 = vmax.f32 %v1465_v40, 0.0 }
 0x1d1   : > { %v1739_v12 = vrot.slane %v4864_v22, 7  ;;  %v4881_v19 = vmax.f32 %v1467_v6, 0.0  ;;  %v1468_v16 = vadd.f32 %v4580_v28, %v1424_v27  ;;  %v1425_v3 = vmul.f32 %v4586_v35, %v1372_v26 }
 0x1d2   : > { %v1374_v46 = vadd.f32 %v1373_v62, %v1261_v24  ;;  %v1375_v39 = vpop.f32.mrf.mxu0  ;;  %v1953_v21 = vpack.c.bf16 %v4864_v22, %v4850_v59 }
 0x1d3   : > { %v1376_v60 = vadd.f32 %v1375_v39, %v1263_v36  ;;  %v4890_v29 = vmax.f32 %v1468_v16, 0.0  ;;  %v1954_v26 = vpack.c.bf16 %v4881_v19, %v4878_v50  ;;  %v4897_v24 = vsel %vm1749_vm0, %v1737_v18, %v1739_v12 }
 0x1d4   : > { %v1426_v6 = vmul.f32 %v4570_v47, %v1374_v46  ;;  %v1379_v2 = vpop.f32.mrf.mxu0  ;;  %5853 = vst [vmem:[#allocation14_spill] sm:$0xff] %v4897_v24  ;;  %v4903_v36 = vsel %vm1749_vm0, %v1720_v45, %v1722_v30  ;;  %v1469_v39 = vadd.f32 %v4595_v48, %v1425_v3  ;;  %v5865_v24 = vrot.slane %v4724_v43, 7 }
 0x1d5   : > { %v1427_v62 = vmul.f32 %v4586_v35, %v1376_v60  ;;  %v1380_v14 = vadd.f32 %v1379_v2, %v1267_v57  ;;  %v1741_v46 = vrot.slane %v4890_v29, 7  ;;  %2826 = vmatprep.mubr.bf16.mxu0 %v1954_v26  ;;  %v5854_v2 = vrot.slane %v4678_v11, 7 }
 0x1d6   : > { %v1470_v23 = vadd.f32 %v4580_v28, %v1426_v6  ;;  %v1381_v40 = vpop.f32.mrf.mxu0  ;;  %2827 = vmatmul.mubr.bf16.gmra.mxu0 %v1953_v21  ;;  %v5855_v6 = vrot.slane %v4812_v13, 7  ;;  %v4936_v21 = vmax.f32 %v1469_v39, 0.0 }
 0x1d7   : > { %v1471_v27 = vadd.f32 %v4595_v48, %v1427_v62  ;;  %v1428_v57 = vmul.f32 %v4570_v47, %v1380_v14  ;;  %v4916_v45 = vsel %vm1749_vm0, %v1722_v30, %v5854_v2  ;;  %v1382_v16 = vadd.f32 %v1381_v40, %v1269_v53 }
 0x1d8   : > { %v4918_v60 = vmax.f32 %v1470_v23, 0.0  ;;  %v1383_v3 = vpop.f32.mrf.mxu0  ;;  %v4924_v26 = vsel %vm1749_vm0, %v5855_v6, %v1737_v18  ;;  %v4928_v14 = vsel %vm1749_vm0, %v1739_v12, %v1741_v46  ;;  %v1792_v53 = vrot.slane %v4708_v5, 1 }
 0x1d9   : > { %5856 = vst [vmem:[#allocation16_spill] sm:$0xff] %v4924_v26  ;;  %5857 = vst [vmem:[#allocation17_spill] sm:$0xff] %v4928_v14  ;;  %v4930_v62 = vmax.f32 %v1471_v27, 0.0  ;;  %v1472_v30 = vadd.f32 %v4580_v28, %v1428_v57  ;;  %v1384_v23 = vadd.f32 %v1383_v3, %v4842_v25  ;;  %v1429_v18 = vmul.f32 %v4586_v35, %v1382_v16 }
 0x1da   : > { %v1743_v40 = vrot.slane %v4918_v60, 7  ;;  %v1385_v2 = vpop.f32.mrf.mxu0  ;;  %v1955_v12 = vpack.c.bf16 %v4918_v60, %v4890_v29  ;;  %v5858_v25 = vand.u32 15, %v4544_v32  ;;  %v1791_v16 = vrot.slane %v4724_v43, 1 }
 0x1db   : > { %v4943_v6 = vmax.f32 %v1472_v30, 0.0  ;;  %v1430_v57 = vmul.f32 %v4570_v47, %v1384_v23  ;;  %v1386_v10 = vadd.f32 %v1385_v2, %v4845_v42  ;;  %v1956_v30 = vpack.c.bf16 %v4930_v62, %v4936_v21 }
 0x1dc   : > { %vm4948_vm2 = vcmp.ne.s32.totalorder %v5858_v25, 0  ;;  %v1793_v47 = vrot.slane %v4728_v20, 1  ;;  %v5861_v26 = vand.u32 15, %v4702_v9  ;;  %v1473_v5 = vadd.f32 %v4595_v48, %v1429_v18 }
 0x1dd   : > { %v1745_v25 = vrot.slane %v4943_v6, 7  ;;  %v1474_v27 = vadd.f32 %v4580_v28, %v1430_v57  ;;  %v1431_v42 = vmul.f32 %v4586_v35, %v1386_v10  ;;  %2836 = vmatprep.mubr.bf16.mxu0 %v1956_v30  ;;  %v5864_v2 = vrot.slane %v4728_v20, 7  ;;  %vm5086_vm6 = vmpackc.low %vm4171_vm5, %vm4948_vm2 }
 0x1de   : > { %vm4965_vm3 = vcmp.ne.s32.totalorder %v5861_v26, 0  ;;  %v4981_v28 = vsel %vm1749_vm0, %v1741_v46, %v1743_v40  ;;  %v5867_v10 = vrot.slane %v4681_v61, 1  ;;  %v5868_v18 = vrot.slane %v4624_v31, 1  ;;  %2837 = vmatmul.mubr.bf16.gmra.mxu0 %v1955_v12 }
 0x1df   : > { %v4977_v23 = vsel %vm1749_vm0, %v5865_v24, %v5864_v2  ;;  %5866 = vst [vmem:[#allocation22_spill] sm:$0xff] %v4981_v28  ;;  %v4983_v9 = vmax.f32 %v1474_v27, 0.0  ;;  %v4989_v35 = vsel %vm1749_vm0, %v1743_v40, %v1745_v25  ;;  %v1795_v46 = vrot.slane %v4777_v44, 1  ;;  %vm5106_vm7 = vmpackc.low %vm4171_vm5, %vm4965_vm3 }
 0x1e0   : > { %v4997_v24 = vsel %vm1814_vm1, %v5868_v18, %v5867_v10  ;;  %v1796_v27 = vrot.slane %v4768_v51, 1  ;;  %v1475_v57 = vadd.f32 %v4595_v48, %v1431_v42  ;;  %v5870_v30 = vmov %v5868_v18 }
 0x1e1   : > { %5869 = vst [vmem:[#allocation23_spill] sm:$0xff] %v4997_v24  ;;  %v5871_v40 = vrot.slane %v4628_v52, 1  ;;  %v1797_v26 = vrot.slane %v4774_v34, 1  ;;  %v1747_v10 = vrot.slane %v4983_v9, 7  ;;  %v1957_v18 = vpack.c.bf16 %v4983_v9, %v4943_v6 }
 0x1e2   : > { %v1798_v48 = vrot.slane %v4790_v15, 1  ;;  %v5017_v12 = vmax.f32 %v1473_v5, 0.0  ;;  %v5019_v31 = vmax.f32 %v1475_v57, 0.0  ;;  %v5873_v42 = vrot.slane %v4678_v11, 1 }
 0x1e3   : > { %v5008_v2 = vsel %vm1814_vm1, %v5871_v40, %v5870_v30  ;;  %v5874_v40 = vrot.slane %v4600_v56, 7  ;;  %v5033_v51 = vsel %vm1749_vm0, %v1745_v25, %v1747_v10  ;;  %v5876_v5 = vrot.slane %v4681_v61, 1 }
 0x1e4   : > { %5872 = vst [vmem:[#allocation24_spill] sm:$0xff] %v5008_v2  ;;  %v5025_v30 = vsel %vm1814_vm1, %v5873_v42, %v1791_v16  ;;  %v5875_v15 = vmov %v5873_v42  ;;  %v5877_v42 = vrot.slane %v4696_v37, 1  ;;  %v5878_v2 = vrot.slane %v4668_v1, 1 }
 0x1e5   : > { %v1780_v14 = vsel %vm1749_vm0, %v1747_v10, %v5874_v40  ;;  %v5041_v57 = vsel %vm1814_vm1, %v5876_v5, %v5875_v15  ;;  %v1799_v40 = vrot.slane %v4826_v41, 1  ;;  %v1958_v61 = vpack.c.bf16 %v5019_v31, %v5017_v12 }
 0x1e6   : > { %v5049_v24 = vsel %vm1814_vm1, %v5878_v2, %v5877_v42  ;;  %v3471_v25 = vpack.c.bf16 %v4634_v33, %v1780_v14  ;;  %v1800_v15 = vrot.slane %v4812_v13, 1  ;;  %v5879_v5 = vand.u32 15, %v4712_v0 }
 0x1e7   : > { %v5882_v33 = vmov %v5878_v2  ;;  %v5883_v14 = vrot.slane %v4642_v55, 1  ;;  %v1801_v0 = vrot.slane %v4830_v38, 1  ;;  %v1802_v13 = vrot.slane %v4850_v59, 1  ;;  %2846 = vmatprep.mubr.bf16.mxu0 %v1958_v61  ;;  %v3937_v55 = vld [vmem:[#allocation7 + $0x260] ss:$8 sps:$4 sm:$0xff]  }
 0x1e8   : > { %vm5059_vm4 = vcmp.ne.s32.totalorder %v5879_v5, 0  ;;  %v5884_v5 = vrot.slane %v4628_v52, 7  ;;  %v5885_v2 = vrot.slane %v5019_v31, 7  ;;  %v1803_v59 = vrot.slane %v4878_v50, 1  ;;  %2847 = vmatmul.mubr.bf16.gmra.mxu0 %v1957_v18 }
 0x1e9   : > { %v5073_v10 = vsel %vm1814_vm1, %v5883_v14, %v5882_v33  ;;  %v3934_v33 = vld [vmem:[#allocation7 + $0x270] ss:$8 sps:$4 sm:$0xff]   ;;  %v5096_v14 = vsel %vm1814_vm1, %v1793_v47, %v1795_v46  ;;  %v5100_v3 = vsel %vm1814_vm1, %v1791_v16, %v1793_v47  ;;  %v5891_v1 = vrot.slane %v4750_v49, 1  ;;  %vm5214_vm8 = vmpackc.low %vm4171_vm5, %vm5059_vm4 }
 0x1ea   : > { %v1781_v42 = vsel %vm1749_vm0, %v5885_v2, %v5884_v5  ;;  %5888 = vst [vmem:[#allocation25_spill] sm:$0xff] %v5100_v3  ;;  %v1805_v2 = vrot.slane %v4881_v19, 1  ;;  %v5892_v47 = vrot.slane %v4696_v37, 1  ;;  %v1806_v18 = vrot.slane %v4890_v29, 1 }
 0x1eb   : > { %v3467_v61 = vpack.c.bf16 %v4873_v63, %v1781_v42  ;;  %v3939_v63 = vld [vmem:[#allocation7 + $0x264] ss:$8 sps:$4 sm:$0xff]   ;;  %v5116_v16 = vsel %vm1814_vm1, %v1792_v53, %v5891_v1  ;;  %v5131_v3 = vsel %vm1814_vm1, %v1797_v26, %v1799_v40  ;;  %v5135_v1 = vsel %vm1814_vm1, %v1795_v46, %v1797_v26 }
 0x1ec   : > { %v5122_v39 = vsel %vm1814_vm1, %v5892_v47, %v1792_v53  ;;  %v1807_v37 = vrot.slane %v4936_v21, 1  ;;  %v5144_v53 = vsel %vm1814_vm1, %v1796_v27, %v1798_v48  ;;  %v1804_v26 = vrot.slane %v4864_v22, 1  ;;  %v3942_v22 = vld [vmem:[#allocation7 + $0x254] ss:$8 sps:$4 sm:$0xff]  }
 0x1ed   : > { %3468 = vmatprep.mubr.msk.bf16.mxu1 %vm5086_vm6, %v3467_v61  ;;  %v5893_v61 = vrot.slane %v4750_v49, 1  ;;  %v1809_v46 = vrot.slane %v4930_v62, 1  ;;  %v5163_v49 = vsel %vm1814_vm1, %v1801_v0, %v1803_v59  ;;  %v1571_v29 = vand.u32 15, %v4764_v7 }
 0x1ee   : > { %3472 = vmatmul.mubr.msk.bf16.vlgmr.msra.gmra.mxu1 %vm5086_vm6, %v3471_v25  ;;  %v5894_v25 = vpack.c.bf16 %v4916_v45, %v4903_v36  ;;  %v5172_v36 = vsel %vm1814_vm1, %v1800_v15, %v1802_v13  ;;  %v5176_v45 = vsel %vm1814_vm1, %v1798_v48, %v1800_v15  ;;  %v5191_v48 = vsel %vm1814_vm1, %v1803_v59, %v1805_v2  ;;  %v3940_v15 = vld [vmem:[#allocation7 + $0x250] ss:$8 sps:$4 sm:$0xff]  }
 0x1ef   : > { %v5150_v47 = vsel %vm1814_vm1, %v5893_v61, %v1796_v27  ;;  %2858 = vmatpush1.bf16.msra.mxu1 %v3934_v33  ;;  %v1811_v27 = vrot.slane %v5017_v12, 1  ;;  %v5168_v61 = vsel %vm1814_vm1, %v1799_v40, %v1801_v0  ;;  %5895 = vst [vmem:[#allocation26_spill] sm:$0xff] %v5176_v45  ;;  %v1808_v33 = vrot.slane %v4918_v60, 1 }
 0x1f0   : > { %3476 = vmatprep.mubr.msk.bf16.mxu1 %vm5106_vm7, %v5894_v25  ;;  %2859 = vmatprep.subr.bf16.mxu1 %v3939_v63  ;;  %v1810_v25 = vrot.slane %v4943_v6, 1  ;;  %v1813_v40 = vrot.slane %v5019_v31, 1  ;;  %v5187_v0 = vsel %vm1814_vm1, %v1805_v2, %v1807_v37  ;;  %v5195_v60 = vsel %vm1814_vm1, %v1804_v26, %v1806_v18 }
 0x1f1   : > { %v1812_v6 = vrot.slane %v4983_v9, 1  ;;  %v3571_v63 = vpack.c.bf16 %v5187_v0, %v5191_v48  ;;  %v5203_v42 = vsel %vm1814_vm1, %v1802_v13, %v1804_v26  ;;  %v5896_v59 = vrot.slane %v4724_v43, 7  ;;  %v3945_v9 = vld [vmem:[#allocation7 + $0x244] ss:$8 sps:$4 sm:$0xff]  }
 0x1f2   : > { %v5897_v2 = vrot.slane %v4678_v11, 7  ;;  %v3575_v13 = vpack.c.bf16 %v5195_v60, %v5203_v42  ;;  %v5222_v26 = vsel %vm1814_vm1, %v1809_v46, %v1811_v27  ;;  %v5226_v11 = vsel %vm1814_vm1, %v1807_v37, %v1809_v46 }
 0x1f3   : > { %2860 = vmatpush1.bf16.msra.mxu1 %v3937_v55  ;;  %v3579_v28 = vpack.c.bf16 %v5222_v26, %v5226_v11  ;;  %v5233_v55 = vsel %vm1814_vm1, %v1808_v33, %v1810_v25  ;;  %v5249_v37 = vsel %vm1814_vm1, %v1811_v27, %v1813_v40  ;;  %v5901_v46 = vrot.slane %v4628_v52, 1 }
 0x1f4   : > { %2861 = vmatprep.subr.bf16.mxu1 %v3942_v22  ;;  %v1773_v45 = vsel %vm1749_vm0, %v5897_v2, %v5896_v59  ;;  %v5237_v22 = vsel %vm1814_vm1, %v1806_v18, %v1808_v33  ;;  %v1732_v59 = vrot.slane %v4774_v34, 7  ;;  %v5900_v2 = vpack.c.bf16 %v4706_v17, %v4672_v4  ;;  %v3943_v4 = vld [vmem:[#allocation7 + $0x240] ss:$8 sps:$4 sm:$0xff]  }
 0x1f5   : > { %v3483_v43 = vpack.c.bf16 %v4977_v23, %v1773_v45  ;;  %v3583_v23 = vpack.c.bf16 %v5233_v55, %v5237_v22  ;;  %v5255_v18 = vsel %vm1814_vm1, %v1813_v40, %v5901_v46  ;;  %v5263_v34 = vsel %vm1814_vm1, %v1810_v25, %v1812_v6  ;;  %v3948_v45 = vld [vmem:[#allocation7 + $0x234] ss:$8 sps:$4 sm:$0xff]  }
 0x1f6   : > { %3480 = vmatmul.mubr.msk.bf16.gmra.mxu1 %vm5106_vm7, %v5900_v2  ;;  %v3587_v17 = vpack.c.bf16 %v5255_v18, %v5249_v37  ;;  %v5902_v5 = vrot.slane %v4600_v56, 1  ;;  %v1730_v27 = vrot.slane %v4777_v44, 7  ;;  %vm3604_vm9 = vcmp.ne.s32.totalorder %v1571_v29, 0 }
 0x1f7   : > { %3484 = vmatprep.mubr.msk.bf16.mxu1 %vm5214_vm8, %v3483_v43  ;;  %2862 = vmatpush1.bf16.msra.mxu1 %v3940_v15  ;;  %v1517_v40 = vadd.s32 64, %v4544_v32  ;;  %v3946_v15 = vld [vmem:[#allocation7 + $0x230] ss:$8 sps:$4 sm:$0xff]   ;;  %v5903_v56 = vrot.slane %v4728_v20, 7  ;;  %vm5282_vm10 = vmpackc.low %vm4171_vm5, %vm3604_vm9  ;;  %v1736_v2 = vrot.slane %v4830_v38, 7  ;;  %v5906_v46 = vpack.c.bf16 %v4738_v8, %v4758_v54 }
 0x1f8   : > { %v5269_v52 = vsel %vm1814_vm1, %v1812_v6, %v5902_v5  ;;  %2863 = vmatprep.subr.bf16.mxu1 %v3945_v9  ;;  %v1767_v25 = vsel %vm1749_vm0, %v1730_v27, %v1732_v59  ;;  %v3951_v9 = vld [vmem:[#allocation7 + $0x224] ss:$8 sps:$4 sm:$0xff]   ;;  %v3949_v20 = vld [vmem:[#allocation7 + $0x220] ss:$8 sps:$4 sm:$0xff]   ;;  %v3954_v5 = vld [vmem:[#allocation7 + $0x214] ss:$8 sps:$4 sm:$0xff]  }
 0x1f9   : > { %v3591_v33 = vpack.c.bf16 %v5269_v52, %v5263_v34  ;;  %v1769_v6 = vsel %vm1749_vm0, %v5903_v56, %v1730_v27  ;;  %v1585_v43 = vand.u32 15, %v1517_v40  ;;  %v1519_v27 = vadd.s32 80, %v4544_v32  ;;  %v3952_v8 = vld [vmem:[#allocation7 + $0x210] ss:$8 sps:$4 sm:$0xff]  }
 0x1fa   : > { %v3491_v29 = vpack.c.bf16 %v1767_v25, %v1769_v6  ;;  %v1740_v25 = vrot.slane %v4881_v19, 7  ;;  %v1738_v6 = vrot.slane %v4878_v50, 7  ;;  %v3963_v50 = vld [vmem:[#allocation7 + $0x2e4] ss:$8 sps:$4 sm:$0xff]  }
 0x1fb   : > { %2864 = vmatpush1.bf16.msra.mxu1 %v3943_v4  ;;  %v1734_v4 = vrot.slane %v4826_v41, 7  ;;  %vm3605_vm11 = vcmp.ne.s32.totalorder %v1585_v43, 0  ;;  %v3957_v41 = vld [vmem:[#allocation7 + $0x204] ss:$8 sps:$4 sm:$0xff]   ;;  %v1599_v40 = vand.u32 15, %v1519_v27 }
 0x1fc   : > { %2865 = vmatprep.subr.bf16.mxu1 %v3948_v45  ;;  %vm5301_vm12 = vmpackc.low %vm4171_vm5, %vm3605_vm11  ;;  %v1759_v19 = vsel %vm1749_vm0, %v1738_v6, %v1740_v25  ;;  %v1761_v44 = vsel %vm1749_vm0, %v1736_v2, %v1738_v6  ;;  %v5914_v27 = vld [vmem:[#allocation21_spill] sm:$0xff]  ;;  %v5919_v6 = vld [vmem:[#allocation16_spill] sm:$0xff] }
 0x1fd   : > { %v1763_v38 = vsel %vm1749_vm0, %v1734_v4, %v1736_v2  ;;  %v1765_v54 = vsel %vm1749_vm0, %v1732_v59, %v1734_v4  ;;  %v3955_v59 = vld [vmem:[#allocation7 + $0x200] ss:$8 sps:$4 sm:$0xff]   ;;  %vm3606_vm13 = vcmp.ne.s32.totalorder %v1599_v40, 0  ;;  %v1744_v4 = vrot.slane %v4930_v62, 7  ;;  %v3970_v43 = vld [vmem:[#allocation7 + $0x2b0] ss:$8 sps:$4 sm:$0xff]  }
 0x1fe   : > { %3488 = vmatmul.mubr.msk.bf16.gmra.mxu1 %vm5214_vm8, %v5906_v46  ;;  %v3499_v45 = vpack.c.bf16 %v1763_v38, %v1765_v54  ;;  %vm5320_vm14 = vmpackc.low %vm4171_vm5, %vm3606_vm13  ;;  %v3507_v46 = vpack.c.bf16 %v1759_v19, %v1761_v44  ;;  %v3961_v2 = vld [vmem:[#allocation7 + $0x2e0] ss:$8 sps:$4 sm:$0xff]   ;;  %v3966_v54 = vld [vmem:[#allocation7 + $0x2d4] ss:$8 sps:$4 sm:$0xff]   ;;  %v5921_v44 = vrot.slane %v5019_v31, 7 }
 0x1ff   : > { %3492 = vmatprep.mubr.msk.bf16.mxu1 %vm5282_vm10, %v3491_v29  ;;  %2866 = vmatpush1.bf16.msra.mxu1 %v3946_v15  ;;  %v5909_v15 = vld [vmem:[#allocation12_spill] sm:$0xff]  ;;  %v1521_v29 = vadd.s32 96, %v4544_v32  ;;  %v3972_v19 = vld [vmem:[#allocation7 + $0x2b4] ss:$8 sps:$4 sm:$0xff]  }
 0x200   : > { %2867 = vmatprep.subr.bf16.mxu1 %v3951_v9  ;;  %v5910_v56 = vpack.c.bf16 %v4796_v58, %v5909_v15  ;;  %v3960_v9 = vld [vmem:[#allocation7 + $0x2f4] ss:$8 sps:$4 sm:$0xff]   ;;  %v3958_v58 = vld [vmem:[#allocation7 + $0x2f0] ss:$8 sps:$4 sm:$0xff]  }
 0x201   : > { %v5928_v40 = vld [vmem:[#allocation23_spill] sm:$0xff] }
 0x203   : > { %2868 = vmatpush1.bf16.msra.mxu1 %v3949_v20  ;;  %v1613_v20 = vand.u32 15, %v1521_v29  ;;  %v3967_v29 = vld [vmem:[#allocation7 + $0x2c0] ss:$8 sps:$4 sm:$0xff]  }
 0x204   : > { %2869 = vmatprep.subr.bf16.mxu1 %v3954_v5  ;;  %v5913_v5 = vld [vmem:[#allocation13_spill] sm:$0xff] }
 0x205   : > { %v5915_v38 = vpack.c.bf16 %v5913_v5, %v5914_v27  ;;  %vm3607_vm15 = vcmp.ne.s32.totalorder %v1613_v20, 0  ;;  %v5941_v20 = vpack.c.bf16 %v5163_v49, %v5168_v61 }
 0x206   : > { %3496 = vmatmul.mubr.msk.bf16.gmra.mxu1 %vm5282_vm10, %v5910_v56  ;;  %vm5339_vm1 = vmpackc.low %vm4171_vm5, %vm3607_vm15 }
 0x207   : > { %3500 = vmatprep.mubr.msk.bf16.mxu1 %vm5301_vm12, %v3499_v45  ;;  %2870 = vmatpush1.bf16.msra.mxu1 %v3952_v8  ;;  %v1742_v8 = vrot.slane %v4936_v21, 7  ;;  %v3964_v45 = vld [vmem:[#allocation7 + $0x2d0] ss:$8 sps:$4 sm:$0xff]   ;;  %v3969_v21 = vld [vmem:[#allocation7 + $0x2c4] ss:$8 sps:$4 sm:$0xff]  }
 0x208   : > { %2871 = vmatprep.subr.bf16.mxu1 %v3957_v41  ;;  %v1523_v41 = vadd.s32 112, %v4544_v32 }
 0x209   : > { %v1755_v62 = vsel %vm1749_vm0, %v1742_v8, %v1744_v4  ;;  %v1757_v7 = vsel %vm1749_vm0, %v1740_v25, %v1742_v8  ;;  %v1746_v25 = vrot.slane %v5017_v12, 7  ;;  %v3975_v12 = vld [vmem:[#allocation7 + $0x2a4] ss:$8 sps:$4 sm:$0xff]   ;;  %v3973_v8 = vld [vmem:[#allocation7 + $0x2a0] ss:$8 sps:$4 sm:$0xff]  }
 0x20a   : > { %v3515_v15 = vpack.c.bf16 %v1755_v62, %v1757_v7  ;;  %v1627_v56 = vand.u32 15, %v1523_v41  ;;  %v3976_v41 = vld [vmem:[#allocation7 + $0x290] ss:$8 sps:$4 sm:$0xff]   ;;  %v3981_v62 = vld [vmem:[#allocation7 + $0x284] ss:$8 sps:$4 sm:$0xff]   ;;  %v5927_v7 = vpack.c.bf16 %v5033_v51, %v4989_v35  ;;  %v5934_v51 = vpack.c.bf16 %v5025_v30, %v5041_v57 }
 0x20b   : > { %2872 = vmatpush1.bf16.msra.mxu1 %v3955_v59  ;;  %v5918_v59 = vld [vmem:[#allocation14_spill] sm:$0xff]  ;;  %v5938_v57 = vpack.c.bf16 %v5116_v16, %v5122_v39  ;;  %v1522_v16 = vadd.s32 104, %v4544_v32 }
 0x20c   : > { %2873 = vmatprep.subr.bf16.mxu1 %v3960_v9  ;;  %v5920_v9 = vpack.c.bf16 %v5918_v59, %v5919_v6  ;;  %vm3608_vm2 = vcmp.ne.s32.totalorder %v1627_v56, 0  ;;  %v3979_v56 = vld [vmem:[#allocation7 + $0x280] ss:$8 sps:$4 sm:$0xff]   ;;  %v1514_v59 = vadd.s32 40, %v4544_v32  ;;  %v5942_v39 = vld [vmem:[#allocation26_spill] sm:$0xff] }
 0x20d   : > { %vm5359_vm3 = vmpackc.low %vm4171_vm5, %vm3608_vm2 }
 0x20e   : > { %3504 = vmatmul.mubr.msk.bf16.gmra.mxu1 %vm5301_vm12, %v5915_v38  ;;  %v5924_v38 = vld [vmem:[#allocation22_spill] sm:$0xff]  ;;  %v1564_v6 = vand.u32 15, %v1514_v59 }
 0x20f   : > { %3508 = vmatprep.mubr.msk.bf16.mxu1 %vm5320_vm14, %v3507_v46  ;;  %2874 = vmatpush2.bf16.msra.mxu1 %v3958_v58  ;;  %v1510_v58 = vadd.s32 8, %v4544_v32  ;;  %v1753_v46 = vsel %vm1749_vm0, %v1744_v4, %v1746_v25  ;;  %v3978_v4 = vld [vmem:[#allocation7 + $0x294] ss:$8 sps:$4 sm:$0xff]  }
 0x210   : > { %2875 = vmatprep.subr.bf16.mxu1 %v3963_v50  ;;  %v1751_v50 = vsel %vm1749_vm0, %v1746_v25, %v5921_v44  ;;  %vm3611_vm8 = vcmp.ne.s32.totalorder %v1564_v6, 15  ;;  %v1516_v25 = vadd.s32 56, %v4544_v32  ;;  %v5936_v44 = vld [vmem:[#allocation25_spill] sm:$0xff] }
 0x211   : > { %v3523_v5 = vpack.c.bf16 %v1751_v50, %v1753_v46  ;;  %v1536_v27 = vand.u32 15, %v1510_v58  ;;  %vm3546_vm9 = vmpackc.low %vm3611_vm8, %vm4171_vm5  ;;  %v5935_v58 = vpack.c.bf16 %v5049_v24, %v5073_v10  ;;  %v5937_v50 = vpack.c.bf16 %v5096_v14, %v5936_v44 }
 0x212   : > { %v5939_v46 = vpack.c.bf16 %v5131_v3, %v5135_v1  ;;  %v1520_v24 = vadd.s32 88, %v4544_v32  ;;  %v5940_v14 = vpack.c.bf16 %v5144_v53, %v5150_v47  ;;  %v1620_v3 = vand.u32 15, %v1522_v16  ;;  %v5947_v16 = vld [vmem:[#allocation18_spill] sm:$0xff] }
 0x213   : > { %2876 = vmatpush2.bf16.msra.mxu1 %v3961_v2  ;;  %v5925_v2 = vld [vmem:[#allocation17_spill] sm:$0xff]  ;;  %vm3609_vm0 = vcmp.ne.s32.totalorder %v1536_v27, 15  ;;  %v5943_v1 = vpack.c.bf16 %v5172_v36, %v5942_v39  ;;  %v1524_v53 = vadd.s32 120, %v4544_v32 }
 0x214   : > { %2877 = vmatprep.subr.bf16.mxu1 %v3966_v54  ;;  %v5926_v31 = vpack.c.bf16 %v5924_v38, %v5925_v2  ;;  %v1512_v54 = vadd.s32 24, %v4544_v32  ;;  %vm3530_vm4 = vmpackc.low %vm3609_vm0, %vm4171_vm5  ;;  %v1606_v10 = vand.u32 15, %v1520_v24 }
 0x215   : > { %v1634_v47 = vand.u32 15, %v1524_v53 }
 0x216   : > { %3512 = vmatmul.mubr.msk.bf16.gmra.mxu1 %vm5320_vm14, %v5920_v9  ;;  %v5931_v9 = vld [vmem:[#allocation20_spill] sm:$0xff]  ;;  %vm3614_vm14 = vcmp.ne.s32.totalorder %v1606_v10, 15 }
 0x217   : > { %3516 = vmatprep.mubr.msk.bf16.mxu1 %vm5339_vm1, %v3515_v15  ;;  %2878 = vmatpush2.bf16.msra.mxu1 %v3964_v45  ;;  %v1550_v45 = vand.u32 15, %v1512_v54  ;;  %vm3570_vm15 = vmpackc.low %vm3614_vm14, %vm4171_vm5 }
 0x218   : > { %2879 = vmatprep.subr.bf16.mxu1 %v3969_v21  ;;  %v5929_v21 = vld [vmem:[#allocation24_spill] sm:$0xff] }
 0x219   : > { %v5930_v15 = vpack.c.bf16 %v5928_v40, %v5929_v21  ;;  %vm3610_vm6 = vcmp.ne.s32.totalorder %v1550_v45, 15 }
 0x21a   : > { %vm3538_vm7 = vmpackc.low %vm3610_vm6, %vm4171_vm5 }
 0x21b   : > { %2880 = vmatpush2.bf16.msra.mxu1 %v3967_v29  ;;  %v5932_v29 = vld [vmem:[#allocation19_spill] sm:$0xff] }
 0x21c   : > { %2881 = vmatprep.subr.bf16.mxu1 %v3972_v19  ;;  %v5933_v35 = vpack.c.bf16 %v5931_v9, %v5932_v29  ;;  %v1578_v19 = vand.u32 15, %v1516_v25 }
 0x21e   : > { %3520 = vmatmul.mubr.msk.bf16.gmra.mxu1 %vm5339_vm1, %v5926_v31  ;;  %vm3612_vm10 = vcmp.ne.s32.totalorder %v1578_v19, 15  ;;  %vm3615_vm1 = vcmp.ne.s32.totalorder %v1620_v3, 15 }
 0x21f   : > { %3524 = vmatprep.mubr.msk.bf16.mxu1 %vm5359_vm3, %v3523_v5  ;;  %2882 = vmatpush2.bf16.msra.mxu1 %v3970_v43  ;;  %v1518_v43 = vadd.s32 72, %v4544_v32  ;;  %vm3554_vm11 = vmpackc.low %vm3612_vm10, %vm4171_vm5 }
 0x220   : > { %2883 = vmatprep.subr.bf16.mxu1 %v3975_v12  ;;  %vm3578_vm2 = vmpackc.low %vm3615_vm1, %vm4171_vm5 }
 0x221   : > { %v1592_v30 = vand.u32 15, %v1518_v43 }
 0x223   : > { %2884 = vmatpush2.bf16.msra.mxu1 %v3973_v8  ;;  %vm3613_vm12 = vcmp.ne.s32.totalorder %v1592_v30, 15 }
 0x224   : > { %2885 = vmatprep.subr.bf16.mxu1 %v3978_v4  ;;  %vm3562_vm13 = vmpackc.low %vm3613_vm12, %vm4171_vm5 }
 0x226   : > { %3528 = vmatmul.mubr.msk.bf16.gmra.mxu1 %vm5359_vm3, %v5927_v7  ;;  %vm3616_vm3 = vcmp.ne.s32.totalorder %v1634_v47, 15 }
 0x227   : > { %2886 = vmatpush2.bf16.msra.mxu1 %v3976_v41  ;;  %3532 = vmatprep.mubr.msk.bf16.mxu1 %vm3530_vm4, %v5930_v15  ;;  %vm3586_vm0 = vmpackc.low %vm3616_vm3, %vm4171_vm5 }
 0x228   : > { %2887 = vmatprep.subr.bf16.mxu1 %v3981_v62 }
 0x22b   : > { %2888 = vmatpush2.bf16.msra.mxu1 %v3979_v56 }
 0x22e   : > { %3536 = vmatmul.mubr.msk.bf16.vlgmr.msra.gmra.mxu1 %vm3530_vm4, %v5933_v35 }
 0x22f   : > { %3540 = vmatprep.mubr.msk.bf16.mxu1 %vm3538_vm7, %v5934_v51 }
 0x236   : > { %3544 = vmatmul.mubr.msk.bf16.gmra.mxu1 %vm3538_vm7, %v5935_v58  ;;  %v2970_v58 = vld [vmem:[%s5792_s5] sm:$0x3] }
 0x237   : > { %3548 = vmatprep.mubr.msk.bf16.mxu1 %vm3546_vm9, %v5937_v50  ;;  %v3014_v50 = vld [vmem:[%s5793_s6] sm:$0x3]  ;;  %v5533_v3 = vrot.slane %v2970_v58, %v5947_v16 }
 0x23e   : > { %3552 = vmatmul.mubr.msk.bf16.gmra.mxu1 %vm3546_vm9, %v5938_v57  ;;  %v5946_v57 = vld [vmem:[#allocation15_spill] sm:$0xff] }
 0x23f   : > { %3556 = vmatprep.mubr.msk.bf16.mxu1 %vm3554_vm11, %v5939_v46  ;;  %v5527_v46 = vrot.slane %v2970_v58, %v5946_v57 }
 0x246   : > { %3560 = vmatmul.mubr.msk.bf16.gmra.mxu1 %vm3554_vm11, %v5940_v14 }
 0x247   : > { %3564 = vmatprep.mubr.msk.bf16.mxu1 %vm3562_vm13, %v5941_v20  ;;  %v5530_v20 = vrot.slane %v3014_v50, %v5946_v57 }
 0x24e   : > { %3568 = vmatmul.mubr.msk.bf16.gmra.mxu1 %vm3562_vm13, %v5943_v1 }
 0x24f   : > { %3572 = vmatprep.mubr.msk.bf16.mxu1 %vm3570_vm15, %v3571_v63 }
 0x256   : > { %3576 = vmatmul.mubr.msk.bf16.gmra.mxu1 %vm3570_vm15, %v3575_v13 }
 0x257   : > { %3580 = vmatprep.mubr.msk.bf16.mxu1 %vm3578_vm2, %v3579_v28 }
 0x25e   : > { %3584 = vmatmul.mubr.msk.bf16.gmra.mxu1 %vm3578_vm2, %v3583_v23 }
 0x25f   : > { %3588 = vmatprep.mubr.msk.bf16.mxu1 %vm3586_vm0, %v3587_v17 }
 0x266   : > { %3592 = vmatmul.mubr.msk.bf16.gmra.mxu1 %vm3586_vm0, %v3591_v33 }
 0x26e   : > { %v2778_v32 = vpop.f32.mrf.mxu0 }
 0x270   : > { %v2780_v61 = vpop.f32.mrf.mxu0 }
 0x272   : > { %v2782_v0 = vpop.f32.mrf.mxu0 }
 0x274   : > { %v2784_v13 = vpop.f32.mrf.mxu0 }
 0x276   : > { %v5446_v28 = vpop.f32.mrf.mxu0 }
 0x278   : > { %v5452_v23 = vpop.f32.mrf.mxu0 }
 0x27a   : > { %v5458_v17 = vpop.f32.mrf.mxu0 }
 0x27c   : > { %v5464_v33 = vpop.f32.mrf.mxu0 }
 0x27e   : > { %v5470_v27 = vpop.f32.mrf.mxu0 }
 0x280   : > { %v5476_v31 = vpop.f32.mrf.mxu0 }
 0x282   : > { %v5482_v54 = vpop.f32.mrf.mxu0 }
 0x284   : > { %v5488_v45 = vpop.f32.mrf.mxu0 }
 0x286   : > { %v5494_v21 = vpop.f32.mrf.mxu0 }
 0x288   : > { %v5500_v59 = vpop.f32.mrf.mxu0 }
 0x28a   : > { %v5506_v29 = vpop.f32.mrf.mxu0 }
 0x28c   : > { %v5512_v25 = vpop.f32.mrf.mxu0 }
 0x28e   : > { %v5524_v43 = vpop.f32.mrf.mxu0 }
 0x290   : > { %v5535_v1 = vpop.f32.mrf.mxu0 }
 0x2ae   : > { %v2665_v42 = vpop.f32.mrf.mxu1 }
 0x2af   : > { %v2779_v30 = vadd.f32 %v2778_v32, %v2665_v42  ;;  %v5539_v42 = vrot.slane %v3014_v50, %v5947_v16 }
 0x2b0   : > { %v2667_v49 = vpop.f32.mrf.mxu1 }
 0x2b1   : > { %v2781_v10 = vadd.f32 %v2780_v61, %v2667_v49 }
 0x2b2   : > { %v2669_v36 = vpop.f32.mrf.mxu1 }
 0x2b3   : > { %v2783_v53 = vadd.f32 %v2782_v0, %v2669_v36 }
 0x2b4   : > { %v2671_v63 = vpop.f32.mrf.mxu1 }
 0x2b5   : > { %v2785_v49 = vadd.f32 %v2784_v13, %v2671_v63 }
 0x2b6   : > { %v5438_v48 = vpop.f32.mrf.mxu1 }
 0x2b7   : > { %v2789_v63 = vadd.f32 %v5446_v28, %v5438_v48 }
 0x2b8   : > { %v5440_v60 = vpop.f32.mrf.mxu1 }
 0x2b9   : > { %v2791_v13 = vadd.f32 %v5452_v23, %v5440_v60  ;;  %v3984_v60 = vld [vmem:[%s4346_s13 + $0x40] sm:$0xff] }
 0x2ba   : > { %v5442_v26 = vpop.f32.mrf.mxu1 }
 0x2bc   : > { %v5444_v11 = vpop.f32.mrf.mxu1 }
 0x2be   : > { %v5448_v55 = vpop.f32.mrf.mxu1 }
 0x2c0   : > { %v5450_v22 = vpop.f32.mrf.mxu1 }
 0x2c2   : > { %v5454_v37 = vpop.f32.mrf.mxu1 }
 0x2c4   : > { %v5456_v18 = vpop.f32.mrf.mxu1 }
 0x2c6   : > { %v5460_v34 = vpop.f32.mrf.mxu1 }
 0x2c8   : > { %v5462_v52 = vpop.f32.mrf.mxu1 }
 0x2ca   : > { %v5466_v12 = vpop.f32.mrf.mxu1 }
 0x2cc   : > { %v5468_v5 = vpop.f32.mrf.mxu1 }
 0x2ce   : > { %v5472_v38 = vpop.f32.mrf.mxu1 }
 0x2d0   : > { %v5474_v2 = vpop.f32.mrf.mxu1 }
 0x2d2   : > { %v5478_v8 = vpop.f32.mrf.mxu1 }
 0x2d4   : > { %v5480_v4 = vpop.f32.mrf.mxu1 }
 0x2d6   : > { %v5484_v41 = vpop.f32.mrf.mxu1 }
 0x2d8   : > { %v5486_v62 = vpop.f32.mrf.mxu1 }
 0x2da   : > { %v5490_v7 = vpop.f32.mrf.mxu1 }
 0x2dc   : > { %v5492_v40 = vpop.f32.mrf.mxu1 }
 0x2de   : > { %v5496_v15 = vpop.f32.mrf.mxu1 }
 0x2e0   : > { %v5498_v56 = vpop.f32.mrf.mxu1 }
 0x2e2   : > { %v5502_v6 = vpop.f32.mrf.mxu1 }
 0x2e4   : > { %v5504_v9 = vpop.f32.mrf.mxu1 }
 0x2e6   : > { %v5508_v35 = vpop.f32.mrf.mxu1 }
 0x2e8   : > { %v5510_v51 = vpop.f32.mrf.mxu1 }
 0x2ea   : > { %v5514_v19 = vpop.f32.mrf.mxu1 }
 0x2eb   : > { %5944 = vst [vmem:[#allocation12_spill] sm:$0xff] %v5514_v19  ;;  %v3982_v19 = vld [vmem:[%s4346_s13 + $0x10] sm:$0xff] }
 0x2ec   : > { %v5519_v44 = vpop.f32.mrf.mxu1 }
 0x2ed   : > { %5945 = vst [vmem:[#allocation13_spill] sm:$0xff] %v5519_v44 }
 0x2ee   : > { %v2891_v24 = vpop.f32.mrf.mxu1 }
 0x2ef   : > { %v2892_v14 = vadd.f32 %v2891_v24, %v2779_v30  ;;  %v5544_v24 = vpop.f32.mrf.mxu0 }
 0x2f0   : > { %v2893_v39 = vpop.f32.mrf.mxu1 }
 0x2f1   : > { %v2982_v47 = vmul.f32 %v5527_v46, %v2892_v14  ;;  %v2894_v32 = vadd.f32 %v2893_v39, %v2781_v10 }
 0x2f2   : > { %v2895_v44 = vpop.f32.mrf.mxu1 }
 0x2f3   : > { %v3026_v61 = vadd.f32 %v5530_v20, %v2982_v47  ;;  %v2983_v30 = vmul.f32 %v5533_v3, %v2894_v32  ;;  %v2896_v58 = vadd.f32 %v2895_v44, %v2783_v53  ;;  %v3983_v44 = vld [vmem:[%s4346_s13 + $0x18] sm:$0xff]  ;;  %v2793_v47 = vadd.f32 %v5458_v17, %v5442_v26 }
 0x2f4   : > { %v2897_v57 = vpop.f32.mrf.mxu1  ;;  %v2795_v26 = vadd.f32 %v5464_v33, %v5444_v11 }
 0x2f5   : > { %v3058_v36 = vadd.f32 %v3982_v19, %v3026_v61  ;;  %v3027_v0 = vadd.f32 %v5539_v42, %v2983_v30  ;;  %v2984_v10 = vmul.f32 %v5527_v46, %v2896_v58  ;;  %v2898_v50 = vadd.f32 %v2897_v57, %v2785_v49  ;;  %v5558_v61 = vpop.f32.mrf.mxu0 }
 0x2f6   : > { %v2901_v14 = vpop.f32.mrf.mxu1 }
 0x2f7   : > { %v3090_v16 = vmax.f32 %v3058_v36, 0.0  ;;  %v3059_v39 = vadd.f32 %v3983_v44, %v3027_v0  ;;  %v3028_v53 = vadd.f32 %v5530_v20, %v2984_v10  ;;  %v2985_v19 = vmul.f32 %v5533_v3, %v2898_v50  ;;  %v3985_v36 = vld [vmem:[%s4346_s13 + $0x48] sm:$0xff]  ;;  %v5574_v11 = vpop.f32.mrf.mxu0 }
 0x2f8   : > { %v2902_v32 = vadd.f32 %v2901_v14, %v2789_v63  ;;  %v2903_v49 = vpop.f32.mrf.mxu1  ;;  %v2799_v63 = vadd.f32 %v5470_v27, %v5448_v55 }
 0x2f9   : > { %3122 = vst [vmem:[%s5560_s1] sm:$0xff] %v3090_v16  ;;  %v3091_v48 = vmax.f32 %v3059_v39, 0.0  ;;  %v3060_v28 = vadd.f32 %v3984_v60, %v3028_v53  ;;  %v3029_v23 = vadd.f32 %v5539_v42, %v2985_v19  ;;  %v2904_v30 = vadd.f32 %v2903_v49, %v2791_v13  ;;  %v3986_v53 = vld [vmem:[%s4346_s13 + $0x70] sm:$0xff] }
 0x2fa   : > { %v2986_v17 = vmul.f32 %v5527_v46, %v2902_v32  ;;  %v2905_v58 = vpop.f32.mrf.mxu1  ;;  %v2801_v60 = vadd.f32 %v5476_v31, %v5450_v22 }
 0x2fb   : > { %3123 = vst [vmem:[%s5560_s1 + $0x8] sm:$0xff] %v3091_v48  ;;  %v3092_v57 = vmax.f32 %v3060_v28, 0.0  ;;  %v3061_v0 = vadd.f32 %v3985_v36, %v3029_v23  ;;  %v2987_v10 = vmul.f32 %v5533_v3, %v2904_v30  ;;  %v2906_v50 = vadd.f32 %v2905_v58, %v2793_v47  ;;  %v3987_v47 = vld [vmem:[%s4346_s13 + $0x78] sm:$0xff]  ;;  %v3988_v58 = vld [vmem:[%s4346_s13 + $0xa0] sm:$0xff] }
 0x2fc   : > { %v3030_v13 = vadd.f32 %v5530_v20, %v2986_v17  ;;  %v2907_v14 = vpop.f32.mrf.mxu1  ;;  %v2803_v28 = vadd.f32 %v5482_v54, %v5454_v37  ;;  %v3989_v54 = vld [vmem:[%s4346_s13 + $0xa8] sm:$0xff] }
 0x2fd   : > { %3124 = vst [vmem:[%s5560_s1 + $0x10] sm:$0xff] %v3092_v57  ;;  %v3093_v33 = vmax.f32 %v3061_v0, 0.0  ;;  %v3031_v16 = vadd.f32 %v5539_v42, %v2987_v10  ;;  %v2988_v44 = vmul.f32 %v5527_v46, %v2906_v50  ;;  %v2908_v39 = vadd.f32 %v2907_v14, %v2795_v26  ;;  %v5588_v26 = vpop.f32.mrf.mxu0 }
 0x2fe   : > { %v3062_v19 = vadd.f32 %v3986_v53, %v3030_v13  ;;  %v2911_v32 = vpop.f32.mrf.mxu1  ;;  %v2805_v10 = vadd.f32 %v5488_v45, %v5456_v18  ;;  %v2809_v14 = vadd.f32 %v5494_v21, %v5460_v34 }
 0x2ff   : > { %3125 = vst [vmem:[%s5560_s1 + $0x18] sm:$0xff] %v3093_v33  ;;  %v3063_v55 = vadd.f32 %v3987_v47, %v3031_v16  ;;  %v3032_v27 = vadd.f32 %v5530_v20, %v2988_v44  ;;  %v2989_v49 = vmul.f32 %v5533_v3, %v2908_v39  ;;  %v2912_v48 = vadd.f32 %v2911_v32, %v2799_v63  ;;  %v5602_v18 = vpop.f32.mrf.mxu0  ;;  %v3990_v44 = vld [vmem:[%s4346_s13 + $0xd0] sm:$0xff] }
 0x300   : > { %v3094_v23 = vmax.f32 %v3062_v19, 0.0  ;;  %v2913_v30 = vpop.f32.mrf.mxu1  ;;  %v2811_v32 = vadd.f32 %v5500_v59, %v5462_v52 }
 0x301   : > { %v3095_v17 = vmax.f32 %v3063_v55, 0.0  ;;  %v3064_v57 = vadd.f32 %v3988_v58, %v3032_v27  ;;  %v3033_v36 = vadd.f32 %v5539_v42, %v2989_v49  ;;  %v2990_v0 = vmul.f32 %v5527_v46, %v2912_v48  ;;  %v3991_v48 = vld [vmem:[%s4346_s13 + $0xd8] sm:$0xff] }
 0x302   : > { %3126 = vst [vmem:[%s5560_s1 + $0x20] sm:$0xff] %v3094_v23  ;;  %v2914_v22 = vadd.f32 %v2913_v30, %v2801_v60  ;;  %v2915_v31 = vpop.f32.mrf.mxu1  ;;  %v5614_v23 = vpop.f32.mrf.mxu0  ;;  %v3992_v30 = vld [vmem:[%s4346_s13 + $0x100] sm:$0xff] }
 0x303   : > { %3127 = vst [vmem:[%s5560_s1 + $0x28] sm:$0xff] %v3095_v17  ;;  %v3096_v37 = vmax.f32 %v3064_v57, 0.0  ;;  %v3065_v50 = vadd.f32 %v3989_v54, %v3033_v36  ;;  %v3034_v63 = vadd.f32 %v5530_v20, %v2990_v0  ;;  %v2916_v13 = vadd.f32 %v2915_v31, %v2803_v28  ;;  %v3993_v31 = vld [vmem:[%s4346_s13 + $0x108] sm:$0xff] }
 0x304   : > { %v2991_v33 = vmul.f32 %v5533_v3, %v2914_v22  ;;  %v2917_v16 = vpop.f32.mrf.mxu1  ;;  %v2813_v57 = vadd.f32 %v5506_v29, %v5466_v12  ;;  %v2815_v36 = vadd.f32 %v5512_v25, %v5468_v5  ;;  %v3994_v25 = vld [vmem:[%s4346_s13 + $0x130] sm:$0xff] }
 0x305   : > { %3128 = vst [vmem:[%s5560_s1 + $0x30] sm:$0xff] %v3096_v37  ;;  %v3097_v45 = vmax.f32 %v3065_v50, 0.0  ;;  %v3066_v39 = vadd.f32 %v3990_v44, %v3034_v63  ;;  %v2992_v53 = vmul.f32 %v5527_v46, %v2916_v13  ;;  %v2918_v19 = vadd.f32 %v2917_v16, %v2805_v10  ;;  %v5630_v13 = vpop.f32.mrf.mxu0 }
 0x306   : > { %v3035_v34 = vadd.f32 %v5539_v42, %v2991_v33  ;;  %v2921_v21 = vpop.f32.mrf.mxu1  ;;  %v2819_v63 = vadd.f32 %v5524_v43, %v5472_v38 }
 0x307   : > { %3129 = vst [vmem:[%s5560_s1 + $0x38] sm:$0xff] %v3097_v45  ;;  %v3098_v47 = vmax.f32 %v3066_v39, 0.0  ;;  %v3036_v55 = vadd.f32 %v5530_v20, %v2992_v53  ;;  %v2993_v27 = vmul.f32 %v5533_v3, %v2918_v19  ;;  %v2922_v49 = vadd.f32 %v2921_v21, %v2809_v14  ;;  %v3995_v39 = vld [vmem:[%s4346_s13 + $0x138] sm:$0xff] }
 0x308   : > { %v3067_v60 = vadd.f32 %v3991_v48, %v3035_v34  ;;  %v2923_v28 = vpop.f32.mrf.mxu1  ;;  %v2821_v45 = vadd.f32 %v5535_v1, %v5474_v2  ;;  %v2823_v34 = vadd.f32 %v5544_v24, %v5478_v8  ;;  %v5644_v2 = vpop.f32.mrf.mxu0  ;;  %v3996_v48 = vld [vmem:[%s4346_s13 + $0x160] sm:$0xff] }
 0x309   : > { %3130 = vst [vmem:[%s5560_s1 + $0x40] sm:$0xff] %v3098_v47  ;;  %v3068_v52 = vadd.f32 %v3992_v30, %v3036_v55  ;;  %v3037_v59 = vadd.f32 %v5539_v42, %v2993_v27  ;;  %v2994_v17 = vmul.f32 %v5527_v46, %v2922_v49  ;;  %v2924_v58 = vadd.f32 %v2923_v28, %v2811_v32  ;;  %v3997_v30 = vld [vmem:[%s4346_s13 + $0x168] sm:$0xff] }
 0x30a   : > { %v3099_v0 = vmax.f32 %v3067_v60, 0.0  ;;  %v2925_v10 = vpop.f32.mrf.mxu1 }
 0x30b   : > { %v3100_v22 = vmax.f32 %v3068_v52, 0.0  ;;  %v3069_v37 = vadd.f32 %v3993_v31, %v3037_v59  ;;  %v3038_v54 = vadd.f32 %v5530_v20, %v2994_v17  ;;  %v2995_v50 = vmul.f32 %v5533_v3, %v2924_v58 }
 0x30c   : > { %3131 = vst [vmem:[%s5560_s1 + $0x48] sm:$0xff] %v3099_v0  ;;  %v2926_v12 = vadd.f32 %v2925_v10, %v2813_v57  ;;  %v2927_v29 = vpop.f32.mrf.mxu1  ;;  %v2825_v17 = vadd.f32 %v5558_v61, %v5480_v4  ;;  %v2829_v58 = vadd.f32 %v5574_v11, %v5484_v41  ;;  %v2842_v0 = vpop.f32.mrf.mxu0  ;;  %v3999_v11 = vld [vmem:[%s4346_s13 + $0x198] sm:$0xff] }
 0x30d   : > { %3132 = vst [vmem:[%s5560_s1 + $0x50] sm:$0xff] %v3100_v22  ;;  %v3101_v5 = vmax.f32 %v3069_v37, 0.0  ;;  %v3070_v14 = vadd.f32 %v3994_v25, %v3038_v54  ;;  %v3039_v33 = vadd.f32 %v5539_v42, %v2995_v50  ;;  %v2928_v16 = vadd.f32 %v2927_v29, %v2815_v36  ;;  %v3998_v22 = vld [vmem:[%s4346_s13 + $0x190] sm:$0xff] }
 0x30e   : > { %v2996_v44 = vmul.f32 %v5527_v46, %v2926_v12  ;;  %v2931_v38 = vpop.f32.mrf.mxu1  ;;  %v2831_v50 = vadd.f32 %v5588_v26, %v5486_v62  ;;  %v2844_v62 = vpop.f32.mrf.mxu0 }
 0x30f   : > { %3133 = vst [vmem:[%s5560_s1 + $0x58] sm:$0xff] %v3101_v5  ;;  %v3102_v43 = vmax.f32 %v3070_v14, 0.0  ;;  %v3071_v53 = vadd.f32 %v3995_v39, %v3039_v33  ;;  %v2997_v19 = vmul.f32 %v5533_v3, %v2928_v16  ;;  %v2932_v32 = vadd.f32 %v2931_v38, %v2819_v63  ;;  %v4000_v33 = vld [vmem:[%s4346_s13 + $0x1c0] sm:$0xff] }
 0x310   : > { %v3040_v21 = vadd.f32 %v5530_v20, %v2996_v44  ;;  %v2933_v47 = vpop.f32.mrf.mxu1  ;;  %v2833_v5 = vadd.f32 %v5602_v18, %v5490_v7  ;;  %v2835_v38 = vadd.f32 %v5614_v23, %v5492_v40 }
 0x311   : > { %3134 = vst [vmem:[%s5560_s1 + $0x60] sm:$0xff] %v3102_v43  ;;  %v3103_v1 = vmax.f32 %v3071_v53, 0.0  ;;  %v3041_v55 = vadd.f32 %v5539_v42, %v2997_v19  ;;  %v2998_v27 = vmul.f32 %v5527_v46, %v2932_v32  ;;  %v2934_v49 = vadd.f32 %v2933_v47, %v2821_v45  ;;  %v4001_v32 = vld [vmem:[%s4346_s13 + $0x1c8] sm:$0xff]  ;;  %v2848_v47 = vpop.f32.mrf.mxu0 }
 0x312   : > { %v3072_v60 = vadd.f32 %v3996_v48, %v3040_v21  ;;  %v2935_v28 = vpop.f32.mrf.mxu1  ;;  %v2841_v48 = vadd.f32 %v5644_v2, %v5498_v56  ;;  %v4004_v56 = vld [vmem:[%s4346_s13 + $0x220] sm:$0xff] }
 0x313   : > { %3135 = vst [vmem:[%s5560_s1 + $0x68] sm:$0xff] %v3103_v1  ;;  %v3073_v8 = vadd.f32 %v3997_v30, %v3041_v55  ;;  %v3042_v24 = vadd.f32 %v5530_v20, %v2998_v27  ;;  %v2999_v52 = vmul.f32 %v5533_v3, %v2934_v49  ;;  %v2936_v59 = vadd.f32 %v2935_v28, %v2823_v34  ;;  %v4002_v1 = vld [vmem:[%s4346_s13 + $0x1f0] sm:$0xff] }
 0x314   : > { %v3104_v57 = vmax.f32 %v3072_v60, 0.0  ;;  %v2937_v36 = vpop.f32.mrf.mxu1  ;;  %v2839_v49 = vadd.f32 %v5630_v13, %v5496_v15  ;;  %v2850_v13 = vpop.f32.mrf.mxu0 }
 0x315   : > { %v3105_v10 = vmax.f32 %v3073_v8, 0.0  ;;  %v3074_v31 = vadd.f32 %v3998_v22, %v3042_v24  ;;  %v3043_v37 = vadd.f32 %v5539_v42, %v2999_v52  ;;  %v3000_v54 = vmul.f32 %v5527_v46, %v2936_v59  ;;  %v4003_v8 = vld [vmem:[%s4346_s13 + $0x1f8] sm:$0xff] }
 0x316   : > { %3136 = vst [vmem:[%s5560_s1 + $0x70] sm:$0xff] %v3104_v57  ;;  %v2938_v4 = vadd.f32 %v2937_v36, %v2825_v17  ;;  %v2941_v61 = vpop.f32.mrf.mxu1  ;;  %v2843_v17 = vadd.f32 %v2842_v0, %v5502_v6  ;;  %v2845_v22 = vadd.f32 %v2844_v62, %v5504_v9  ;;  %v4005_v0 = vld [vmem:[%s4346_s13 + $0x228] sm:$0xff] }
 0x317   : > { %3137 = vst [vmem:[%s5560_s1 + $0x78] sm:$0xff] %v3105_v10  ;;  %v3106_v41 = vmax.f32 %v3074_v31, 0.0  ;;  %v3075_v63 = vadd.f32 %v3999_v11, %v3043_v37  ;;  %v3044_v12 = vadd.f32 %v5530_v20, %v3000_v54  ;;  %v2942_v29 = vadd.f32 %v2941_v61, %v2829_v58 }
 0x318   : > { %v3001_v25 = vmul.f32 %v5533_v3, %v2938_v4  ;;  %v2943_v14 = vpop.f32.mrf.mxu1  ;;  %v2849_v61 = vadd.f32 %v2848_v47, %v5508_v35  ;;  %v5949_v47 = vld [vmem:[#allocation13_spill] sm:$0xff] }
 0x319   : > { %3138 = vst [vmem:[%s5560_s1 + $0x80] sm:$0xff] %v3106_v41  ;;  %v3107_v26 = vmax.f32 %v3075_v63, 0.0  ;;  %v3076_v16 = vadd.f32 %v4000_v33, %v3044_v12  ;;  %v3002_v45 = vmul.f32 %v5527_v46, %v2942_v29  ;;  %v2944_v44 = vadd.f32 %v2943_v14, %v2831_v50  ;;  %v2852_v63 = vpop.f32.mrf.mxu0 }
 0x31a   : > { %v3045_v43 = vadd.f32 %v5539_v42, %v3001_v25  ;;  %v2945_v7 = vpop.f32.mrf.mxu1  ;;  %v4006_v25 = vld [vmem:[%s4346_s13 + $0x250] sm:$0xff] }
 0x31b   : > { %3139 = vst [vmem:[%s5560_s1 + $0x88] sm:$0xff] %v3107_v26  ;;  %v3108_v18 = vmax.f32 %v3076_v16, 0.0  ;;  %v3046_v39 = vadd.f32 %v5530_v20, %v3002_v45  ;;  %v3003_v53 = vmul.f32 %v5533_v3, %v2944_v44  ;;  %v2946_v19 = vadd.f32 %v2945_v7, %v2833_v5  ;;  %v4007_v26 = vld [vmem:[%s4346_s13 + $0x258] sm:$0xff] }
 0x31c   : > { %v3077_v34 = vadd.f32 %v4001_v32, %v3045_v43  ;;  %v2947_v21 = vpop.f32.mrf.mxu1  ;;  %v2851_v44 = vadd.f32 %v2850_v13, %v5510_v51 }
 0x31d   : > { %3140 = vst [vmem:[%s5560_s1 + $0x90] sm:$0xff] %v3108_v18  ;;  %v3078_v55 = vadd.f32 %v4002_v1, %v3046_v39  ;;  %v3047_v40 = vadd.f32 %v5539_v42, %v3003_v53  ;;  %v3004_v23 = vmul.f32 %v5527_v46, %v2946_v19  ;;  %v2948_v27 = vadd.f32 %v2947_v21, %v2835_v38  ;;  %v5948_v38 = vld [vmem:[#allocation12_spill] sm:$0xff]  ;;  %v2854_v39 = vpop.f32.mrf.mxu0 }
 0x31e   : > { %v3109_v60 = vmax.f32 %v3077_v34, 0.0  ;;  %v2951_v28 = vpop.f32.mrf.mxu1  ;;  %v2853_v43 = vadd.f32 %v2852_v63, %v5948_v38  ;;  %v4008_v19 = vld [vmem:[%s4346_s13 + $0x280] sm:$0xff]  ;;  %v2855_v1 = vadd.f32 %v2854_v39, %v5949_v47 }
 0x31f   : > { %v3110_v30 = vmax.f32 %v3078_v55, 0.0  ;;  %v3079_v24 = vadd.f32 %v4003_v8, %v3047_v40  ;;  %v3048_v52 = vadd.f32 %v5530_v20, %v3004_v23  ;;  %v3005_v59 = vmul.f32 %v5533_v3, %v2948_v27  ;;  %v4009_v23 = vld [vmem:[%s4346_s13 + $0x288] sm:$0xff]  ;;  %v4010_v8 = vld [vmem:[%s4346_s13 + $0x2b0] sm:$0xff] }
 0x320   : > { %3141 = vst [vmem:[%s5560_s1 + $0x98] sm:$0xff] %v3109_v60  ;;  %v2952_v58 = vadd.f32 %v2951_v28, %v2839_v49  ;;  %v2953_v15 = vpop.f32.mrf.mxu1 }
 0x321   : > { %3142 = vst [vmem:[%s5560_s1 + $0xa0] sm:$0xff] %v3110_v30  ;;  %v3111_v57 = vmax.f32 %v3079_v24, 0.0  ;;  %v3080_v2 = vadd.f32 %v4004_v56, %v3048_v52  ;;  %v3049_v36 = vadd.f32 %v5539_v42, %v3005_v59  ;;  %v2954_v10 = vadd.f32 %v2953_v15, %v2841_v48 }
 0x322   : > { %v3006_v31 = vmul.f32 %v5527_v46, %v2952_v58  ;;  %v2955_v37 = vpop.f32.mrf.mxu1 }
 0x323   : > { %3143 = vst [vmem:[%s5560_s1 + $0xa8] sm:$0xff] %v3111_v57  ;;  %v3112_v6 = vmax.f32 %v3080_v2, 0.0  ;;  %v3081_v54 = vadd.f32 %v4005_v0, %v3049_v36  ;;  %v3007_v50 = vmul.f32 %v5533_v3, %v2954_v10  ;;  %v2956_v4 = vadd.f32 %v2955_v37, %v2843_v17  ;;  %v4011_v57 = vld [vmem:[%s4346_s13 + $0x2b8] sm:$0xff]  ;;  %v4012_v2 = vld [vmem:[%s4346_s13 + $0x2e0] sm:$0xff] }
 0x324   : > { %v3050_v41 = vadd.f32 %v5530_v20, %v3006_v31  ;;  %v2957_v11 = vpop.f32.mrf.mxu1  ;;  %v4013_v31 = vld [vmem:[%s4346_s13 + $0x2e8] sm:$0xff]  ;;  %s4172_s13 = smov [#allocation8]  }
 0x325   : > { %3144 = vst [vmem:[%s5560_s1 + $0xb0] sm:$0xff] %v3112_v6  ;;  %v3113_v9 = vmax.f32 %v3081_v54, 0.0  ;;  %v3051_v12 = vadd.f32 %v5539_v42, %v3007_v50  ;;  %v3008_v29 = vmul.f32 %v5527_v46, %v2956_v4  ;;  %v2958_v5 = vadd.f32 %v2957_v11, %v2845_v22  ;;  %s4098_s19 = sshll.u32 %s4172_s13, 4  ;;  %s4099_s19 = int_to_ptr.vmem [resolvable:$false] %s4098_s19 }
 0x326   : > { %v3082_v14 = vadd.f32 %v4006_v25, %v3050_v41  ;;  %v2961_v62 = vpop.f32.mrf.mxu1  ;;  %s4100_s21 = scalar_lea.vmem %s4099_s19, 8192  ;;  %p4101_p6 = scmp.lt.s32.totalorder %s5742_s14, %s4099_s19 }
 0x327   : > { %3145 = vst [vmem:[%s5560_s1 + $0xb8] sm:$0xff] %v3113_v9  ;;  %v3083_v33 = vadd.f32 %v4007_v26, %v3051_v12  ;;  %v3052_v35 = vadd.f32 %v5530_v20, %v3008_v29  ;;  %v3009_v16 = vmul.f32 %v5533_v3, %v2958_v5  ;;  %v2962_v45 = vadd.f32 %v2961_v62, %v2849_v61  ;;  %p4102_p12 = scmp.lt.s32.totalorder %s4100_s21, %s4094_s16 }
 0x328   : > { %v3114_v7 = vmax.f32 %v3082_v14, 0.0  ;;  %v2963_v18 = vpop.f32.mrf.mxu1 }
 0x329   : > { %v3115_v53 = vmax.f32 %v3083_v33, 0.0  ;;  %v3084_v32 = vadd.f32 %v4008_v19, %v3052_v35  ;;  %v3053_v34 = vadd.f32 %v5539_v42, %v3009_v16  ;;  %v3010_v21 = vmul.f32 %v5527_v46, %v2962_v45  ;;  %p4103_p7 = por %p4102_p12, %p4101_p6 }
 0x32a   : > { %3146 = vst [vmem:[%s5560_s1 + $0xc0] sm:$0xff] %v3114_v7  ;;  %v2964_v55 = vadd.f32 %v2963_v18, %v2851_v44  ;;  %v2965_v51 = vpop.f32.mrf.mxu1 }
 0x32b   : > { %3147 = vst [vmem:[%s5560_s1 + $0xc8] sm:$0xff] %v3115_v53  ;;  %v3116_v40 = vmax.f32 %v3084_v32, 0.0  ;;  %v3085_v27 = vadd.f32 %v4009_v23, %v3053_v34  ;;  %v3054_v49 = vadd.f32 %v5530_v20, %v3010_v21  ;;  %v2966_v48 = vadd.f32 %v2965_v51, %v2853_v43  ;;  %p4104_p9 = pnand %p4103_p7, %p4097_p2 }
 0x32c   : > { %v3011_v60 = vmul.f32 %v5533_v3, %v2964_v55  ;;  %v2967_v28 = vpop.f32.mrf.mxu1 }
 0x32d   : > { %3148 = vst [vmem:[%s5560_s1 + $0xd0] sm:$0xff] %v3116_v40  ;;  %v3117_v30 = vmax.f32 %v3085_v27, 0.0  ;;  %v3086_v24 = vadd.f32 %v4010_v8, %v3054_v49  ;;  %v3012_v52 = vmul.f32 %v5527_v46, %v2966_v48  ;;  %v2968_v59 = vadd.f32 %v2967_v28, %v2855_v1 }
 0x32e   : > { %v3055_v17 = vadd.f32 %v5539_v42, %v3011_v60 }
 0x32f   : > { %3149 = vst [vmem:[%s5560_s1 + $0xd8] sm:$0xff] %v3117_v30  ;;  %v3118_v58 = vmax.f32 %v3086_v24, 0.0  ;;  %v3056_v15 = vadd.f32 %v5530_v20, %v3012_v52  ;;  %v3013_v13 = vmul.f32 %v5533_v3, %v2968_v59 }
 0x330   : > { %v3087_v56 = vadd.f32 %v4011_v57, %v3055_v17 }
 0x331   : > { %3150 = vst [vmem:[%s5560_s1 + $0xe0] sm:$0xff] %v3118_v58  ;;  %v3088_v36 = vadd.f32 %v4012_v2, %v3056_v15  ;;  %v3057_v46 = vadd.f32 %v5539_v42, %v3013_v13 }
 0x332   : > { %v3119_v10 = vmax.f32 %v3087_v56, 0.0 }
 0x333   : > { %v3120_v22 = vmax.f32 %v3088_v36, 0.0  ;;  %v3089_v37 = vadd.f32 %v4013_v31, %v3057_v46 }
 0x334   : > { %3151 = vst [vmem:[%s5560_s1 + $0xe8] sm:$0xff] %v3119_v10 }
 0x335   : > { %3152 = vst [vmem:[%s5560_s1 + $0xf0] sm:$0xff] %v3120_v22  ;;  %v3121_v20 = vmax.f32 %v3089_v37, 0.0 }
 0x337   : > { %3153 = vst [vmem:[%s5560_s1 + $0xf8] sm:$0xff] %v3121_v20 }
 0x338   : > { %4107 = shalt.err (!%p4104_p9)
}
 0x339   : > { %s4108_s22 = scalar_lea.hbm %s5740_s9, 4096  ;;  %s4112_s10 = scalar_lea.hbm %s5794_s7, 8192 }
 0x33a   : > { %p4109_p13 = scmp.ne.s32.totalorder %s5740_s9, %s4108_s22  ;;  %p4113_p4 = scmp.lt.s32.totalorder %s5740_s9, %s5794_s7 }
 0x33b   : > { %p4114_p8 = scmp.lt.s32.totalorder %s4112_s10, %s4108_s22 }
 0x33c   : > { %p4110_p5 = pnand %p4109_p13, %p5950_p10 }
 0x33d   : > { %p4115_p3 = por %p4114_p8, %p4113_p4 }
 0x33e   : > { %p4111_p0 = pneg %p4110_p5 }
 0x340   : > { %p4116_p11 = pnand %p4115_p3, %p4111_p0 }
 0x342   : > { %4119 = shalt.err (!%p4116_p11)
}
 0x343   : > { %s4173_s18 = smov 256   ;;  %s4174_s30 = smov 16  }
 0x344   : > { %3630 = dma.vmem_to_hbm [thread:$0]  (%p5950_p10), %s5742_s14, 4096, %s5740_s9, %s3155_s28, %s4173_s18, %s4173_s18, %s4174_s30  }
 0x345 PF: > { %s3184_s16 = sand.u32 1, %s4150_s24   ;;  %p5951_p1 = scmp.ne.s32.totalorder %s5823_s8, 0 }
 0x346   : > { %p5952_p2 = scmp.ge.s32.totalorder %s4162_s27, 2  ;;  %s3185_s13 = scalar_lea.sflag [#allocation4], %s3184_s16 }
 0x348   : > { %p3644_p6 = pnand %p5952_p2, %p5951_p1 }
 0x34a   : > { %p3645_p12 = pneg %p3644_p6 }
 0x34c   : > { %4145 = dma.done.wait (%p3645_p12), %s3185_s13, 4096  }
 0x34d   : > { %4147 = vsyncadd (%p3645_p12), %s3185_s13, 4294963200  ;;  %p21_p7 = scmp.ge.s32.totalorder %s4287_s23, 4   ;;  %s5953_s24 = smov %s4154_s25 }
 0x34e   : > { %s5954_s25 = smov %s4158_s26  ;;  %s5955_s26 = smov %s4303_s12 }
 0x34f   : > { %s5956_s27 = smov %s4287_s23  ;;  %23 = sbr.rel (!%p21_p7) target bundleno = 8 (0x8), region = 101 }
 0x354   :  { %3190 = vsyncpa [#allocation3], 1 }
 0x355   :  { %3192 = vsyncpa [#allocation3 + $0x1], 1 }
 0x356   :  { %3193 = vsyncpa [#allocation6], 1 }
 0x357   :  { %3194 = vsyncpa [#allocation4], 1 }
 0x358   :  { %3196 = vsyncpa [#allocation4 + $0x1], 1 }

</bundles_post_ra>
